<compile_context>
chip_gen: v5e
topology: v5e:2x2
jax: 0.10.0
libtpu: 0.0.40
codegen_flags: <defaults>
</compile_context>

<pallas_src>
import math
from functools import partial

import jax
import jax.numpy as jnp
from jax.experimental import pallas as pl
from jax.experimental.pallas import tpu as pltpu


# --------------------------------------------------------------------------
# kernel
# --------------------------------------------------------------------------
def _decoder_core_kernel(*refs, use_fc):
    """Two fused LSTM cells on a packed state slab [h_att|h_lang|c_att|c_lang].

    Weights are pre-transposed to (K, 4H) with gate columns permuted to
    (i, f, o | g); each input segment has its own weight matrix (K-partial
    matmuls, no fused-row scratch assembly)."""
    if use_fc:
        (st_ref, fc_ref, emb_ref, wpf_ref, aconv_ref,
         wa_prev_ref, wa_fc_ref, wa_emb_ref, wa_hh_ref, ba_ref,
         wl_x_ref, wl_hatt_ref, wl_hh_ref, bl_ref, new_st_ref) = refs
    else:
        (st_ref, emb_ref, wpf_ref, aconv_ref,
         wa_prev_ref, wa_emb_ref, wa_hh_ref, ba_ref,
         wl_x_ref, wl_hatt_ref, wl_hh_ref, bl_ref, new_st_ref) = refs
        fc_ref = wa_fc_ref = None

    H = st_ref.shape[-1] // 4
    bf16 = jnp.bfloat16
    f32 = jnp.float32

    st = st_ref[...]                       # one lane-dense load of the slab
    h0 = st[:, 0:H]                        # attention-LSTM hidden (layer 0)
    h1 = st[:, H:2 * H]                    # language-LSTM hidden  (layer 1) == prev_h
    c0 = st[:, 2 * H:3 * H].astype(f32)
    c1 = st[:, 3 * H:4 * H].astype(f32)
    h0b = h0.astype(bf16)
    h1b = h1.astype(bf16)

    def mm(x, w_ref):                      # bf16 x bf16 -> f32 accumulate
        return jnp.dot(x, w_ref[...], preferred_element_type=f32)

    # ---- attention-LSTM pre-activations: K-partial accumulating matmuls ----
    g_att = (mm(h1b, wa_prev_ref) + mm(h0b, wa_hh_ref)
             + mm(emb_ref[...].astype(bf16), wa_emb_ref))
    if use_fc:
        g_att = g_att + mm(fc_ref[...].astype(bf16), wa_fc_ref)
    g_att = g_att + ba_ref[...].astype(f32)

    # ---- language-LSTM partials independent of h_att (issued early so the
    #      second GEMM's latency hides behind the attention-gate EUP/VPU work)
    x_lang = (wpf_ref[...] + aconv_ref[...]).astype(bf16)
    g_lang = mm(x_lang, wl_x_ref) + mm(h1b, wl_hh_ref) + bl_ref[...].astype(f32)

    # ---- attention-LSTM gates (columns pre-permuted to (i, f, o | g)) -------
    sig_a = jax.nn.sigmoid(g_att[:, :3 * H])
    i_a, f_a, o_a = sig_a[:, :H], sig_a[:, H:2 * H], sig_a[:, 2 * H:]
    g_a = jnp.tanh(g_att[:, 3 * H:])
    c_att = f_a * c0 + i_a * g_a
    h_att = o_a * jnp.tanh(c_att)

    # ---- language LSTM: add the h_att-dependent partial, then gates ---------
    g_lang = g_lang + mm(h_att.astype(bf16), wl_hatt_ref)
    sig_l = jax.nn.sigmoid(g_lang[:, :3 * H])
    i_l, f_l, o_l = sig_l[:, :H], sig_l[:, H:2 * H], sig_l[:, 2 * H:]
    g_l = jnp.tanh(g_lang[:, 3 * H:])
    c_lang = f_l * c1 + i_l * g_l
    h_lang = o_l * jnp.tanh(c_lang)

    # output = dropout(h_lang) -> identity in eval; caller reads slab[:, H:2H].
    od = new_st_ref.dtype
    new_st_ref[:, 0:H] = h_att.astype(od)
    new_st_ref[:, H:2 * H] = h_lang.astype(od)
    new_st_ref[:, 2 * H:3 * H] = c_att.astype(od)
    new_st_ref[:, 3 * H:4 * H] = c_lang.astype(od)


# --------------------------------------------------------------------------
# one-time parameter preparation (hoisted out of the per-step call)
# --------------------------------------------------------------------------
def prepare_decoder_params(params, *, embed_dim, fc_dim=None):
    """One-time preprocessing of the two torch.nn.LSTMCell parameter sets.

    Splits w_ih along its input (K) axis into per-segment matrices (so the
    kernel does K-partial matmuls), transposes to (K, 4H), permutes the gate
    columns (i,f,g,o) -> (i,f,o,g), pre-adds the two bias vectors, and casts
    everything to bf16.  fc_dim=None <=> global_img_in_attn_lstm=False."""
    H = params["att_w_hh"].shape[1]

    def _reorder(w):     # (..., 4H): (i, f, g, o) -> (i, f, o, g)
        return jnp.concatenate(
            [w[..., :2 * H], w[..., 3 * H:], w[..., 2 * H:3 * H]], axis=-1)

    def _prep_w(w):      # torch (4H, K_seg) -> (K_seg, 4H), gate-permuted bf16
        return _reorder(w.T).astype(jnp.bfloat16)

    att_ih = params["att_w_ih"]            # (4H, H [+ F] + E)
    off = 0
    wa_prev = _prep_w(att_ih[:, off:off + H]); off += H
    wa_fc = None
    if fc_dim is not None:
        wa_fc = _prep_w(att_ih[:, off:off + fc_dim]); off += fc_dim
    wa_emb = _prep_w(att_ih[:, off:off + embed_dim]); off += embed_dim
    assert off == att_ih.shape[1], "embed_dim/fc_dim inconsistent with att_w_ih"

    lang_ih = params["lang_w_ih"]          # (4H, D + H)
    D = lang_ih.shape[1] - H

    prep = {
        "wa_prev": wa_prev,
        "wa_emb": wa_emb,
        "wa_hh": _prep_w(params["att_w_hh"]),
        "b_att": _reorder((params["att_b_ih"] + params["att_b_hh"])
                          .reshape(1, -1)).astype(jnp.bfloat16),
        "wl_x": _prep_w(lang_ih[:, :D]),
        "wl_hatt": _prep_w(lang_ih[:, D:]),
        "wl_hh": _prep_w(params["lang_w_hh"]),
        "b_lang": _reorder((params["lang_b_ih"] + params["lang_b_hh"])
                           .reshape(1, -1)).astype(jnp.bfloat16),
    }
    if wa_fc is not None:
        prep["wa_fc"] = wa_fc
    return prep


# --------------------------------------------------------------------------
# packed-state step (the Pallas path; recommended inside a decode loop)
# --------------------------------------------------------------------------
def pack_state(state):
    """(h(2,B,H), c(2,B,H)) -> lane-dense (B, 4H) slab [h_att|h_lang|c_att|c_lang]."""
    h, c = state
    return jnp.concatenate([h[0], h[1], c[0], c[1]], axis=1)


def unpack_state(packed, H):
    """(B, 4H) slab -> (h(2,B,H), c(2,B,H)) torch-layout state."""
    h_att, h_lang = packed[:, :H], packed[:, H:2 * H]
    c_att, c_lang = packed[:, 2 * H:3 * H], packed[:, 3 * H:]
    return (jnp.stack([h_att, h_lang]), jnp.stack([c_att, c_lang]))


def _nbytes(a, rows=None):
    n = math.prod(a.shape) if rows is None else rows * math.prod(a.shape[1:])
    return int(n) * a.dtype.itemsize


def decoder_core_step_packed(packed_state, embedded_word, fc_feats,
                             weighted_pool_feat, attn_conv, prep, *,
                             batch_block=None, vmem_limit_bytes=None):
    """One decoder step on the packed state slab (B, 4H).

    Returns the new packed slab; the module output (dropout(h_lang), identity
    in eval) is new_slab[:, H:2H].  `global_img_in_attn_lstm` is inferred from
    the presence of "wa_fc" in `prep`.  On v7x pass batch_block=B//2 (multiple
    of 8) so the two TensorCores split the batch; on v5e/v6e leave the default
    single grid step."""
    use_fc = "wa_fc" in prep
    B, fourH = packed_state.shape
    dtype = packed_state.dtype

    bt = B if batch_block is None else min(batch_block, B)
    assert B % bt == 0, "batch_block must divide the batch"
    grid = (B // bt,)

    def row_spec(d):                       # per-step (batch-blocked) operands
        return pl.BlockSpec((bt, d), lambda i: (i, 0))

    inputs = [packed_state]
    in_specs = [row_spec(fourH)]
    if use_fc:
        inputs.append(fc_feats)
        in_specs.append(row_spec(fc_feats.shape[1]))
    inputs += [embedded_word, weighted_pool_feat, attn_conv]
    in_specs += [row_spec(embedded_word.shape[1]),
                 row_spec(weighted_pool_feat.shape[1]),
                 row_spec(attn_conv.shape[1])]
    # TODO(synk): if the producer can emit [fc|emb|wpf|aconv] as one contiguous
    #             slab, these four small DMAs collapse into one.

    w_keys = (["wa_prev"] + (["wa_fc"] if use_fc else []) +
              ["wa_emb", "wa_hh", "b_att", "wl_x", "wl_hatt", "wl_hh", "b_lang"])
    weights = [prep[k] for k in w_keys]

    # Rough VMEM budget: double-buffered per-step blocks + weights + slack.
    if vmem_limit_bytes is None:
        est = (2 * sum(_nbytes(a, bt) for a in inputs)       # streamed inputs
               + 2 * _nbytes(packed_state, bt)                # output block
               + 2 * sum(_nbytes(w) for w in weights)         # worst case (2x)
               + (4 << 20))
        vmem_limit_bytes = int(min(max(est, 16 << 20), 64 << 20))

    def call(single_buffer_weights):
        def w_spec(w):
            nd = w.ndim
            if single_buffer_weights:
                # Grid-invariant blocks: double-buffering only wastes VMEM.
                return pl.BlockSpec(w.shape, lambda i: (0,) * nd,
                                    pipeline_mode=pl.Buffered(1))
            return pl.BlockSpec(w.shape, lambda i: (0,) * nd)

        return pl.pallas_call(
            partial(_decoder_core_kernel, use_fc=use_fc),
            grid=grid,
            in_specs=in_specs + [w_spec(w) for w in weights],
            out_specs=pl.BlockSpec((bt, fourH), lambda i: (i, 0)),
            out_shape=jax.ShapeDtypeStruct((B, fourH), dtype),
            compiler_params=pltpu.CompilerParams(
                dimension_semantics=("parallel",),
                vmem_limit_bytes=vmem_limit_bytes),
        )(*inputs, *weights)

    try:
        return call(True)
    except Exception:
        # pipeline_mode=pl.Buffered(1) not supported by this jax/Mosaic build;
        # fall back to default (double-buffered) weight specs.
        return call(False)


# --------------------------------------------------------------------------
# torch-layout forward wrapper (AttenedDecoderCore.forward semantics)
# --------------------------------------------------------------------------
def attened_decoder_core(embedded_word, fc_feats, weighted_pool_feat, attn_conv,
                         state, prep, *, batch_block=None, vmem_limit_bytes=None):
    """JAX/Pallas equivalent of AttenedDecoderCore.forward (eval mode).

    state = (h (2,B,H), c (2,B,H)) in the torch layout; `prep` comes from
    prepare_decoder_params().  Returns (output, new_state) with
    output = dropout(h_lang) = h_lang (eval) and new_state in the same layout.
    For decode loops prefer decoder_core_step_packed (keeps the state packed
    and lane-dense between steps)."""
    H = state[0].shape[-1]
    packed = pack_state(state)
    new_packed = decoder_core_step_packed(
        packed, embedded_word, fc_feats, weighted_pool_feat, attn_conv, prep,
        batch_block=batch_block, vmem_limit_bytes=vmem_limit_bytes)
    output = new_packed[:, H:2 * H]
    return output, unpack_state(new_packed, H)


# --------------------------------------------------------------------------
# pure-JAX reference (original torch semantics / gate order / unfused)
# --------------------------------------------------------------------------
def _lstm_cell_ref(x, h, c, w_ih, w_hh, b_ih, b_hh):
    g = x @ w_ih.T + b_ih + h @ w_hh.T + b_hh
    H = h.shape[-1]
    i = jax.nn.sigmoid(g[:, :H])
    f = jax.nn.sigmoid(g[:, H:2 * H])
    gg = jnp.tanh(g[:, 2 * H:3 * H])
    o = jax.nn.sigmoid(g[:, 3 * H:])
    c2 = f * c + i * gg
    return o * jnp.tanh(c2), c2


def _reference(embedded_word, fc_feats, weighted_pool_feat, attn_conv, state, p,
               global_img_in_attn_lstm=True):
    h_stack, c_stack = state
    prev_h = h_stack[-1]
    if global_img_in_attn_lstm:
        x_att = jnp.concatenate([prev_h, fc_feats, embedded_word], axis=1)
    else:
        x_att = jnp.concatenate([prev_h, embedded_word], axis=1)
    h_att, c_att = _lstm_cell_ref(x_att, h_stack[0], c_stack[0],
                                  p["att_w_ih"], p["att_w_hh"],
                                  p["att_b_ih"], p["att_b_hh"])
    x_lang = jnp.concatenate([weighted_pool_feat + attn_conv, h_att], axis=1)
    h_lang, c_lang = _lstm_cell_ref(x_lang, h_stack[1], c_stack[1],
                                    p["lang_w_ih"], p["lang_w_hh"],
                                    p["lang_b_ih"], p["lang_b_hh"])
    return h_lang, (jnp.stack([h_att, h_lang]), jnp.stack([c_att, c_lang]))


# --------------------------------------------------------------------------
if __name__ == "__main__":
    B = 8          # batch (sublane-aligned)
    H = 32         # opts.rnn_size (4H = 128 -> lane-dense packed state)
    E = 32         # input_encoding_size (embedded word)
    F = 32         # fc_feats dim
    D = 32         # weighted_pool_feat / attn_conv dim

    key = jax.random.PRNGKey(0)
    ks = jax.random.split(key, 22)

    embedded_word = jax.random.normal(ks[0], (B, E), jnp.float32)
    fc_feats = jax.random.normal(ks[1], (B, F), jnp.float32)
    weighted_pool_feat = jax.random.normal(ks[2], (B, D), jnp.float32)
    attn_conv = jax.random.normal(ks[3], (B, D), jnp.float32)
    state = (jax.random.normal(ks[4], (2, B, H), jnp.float32),
             jax.random.normal(ks[5], (2, B, H), jnp.float32))

    s = 0.1
    params = {
        "att_w_ih":  s * jax.random.normal(ks[6],  (4 * H, H + F + E), jnp.float32),
        "att_w_hh":  s * jax.random.normal(ks[7],  (4 * H, H), jnp.float32),
        "att_b_ih":  s * jax.random.normal(ks[8],  (4 * H,), jnp.float32),
        "att_b_hh":  s * jax.random.normal(ks[9],  (4 * H,), jnp.float32),
        "lang_w_ih": s * jax.random.normal(ks[10], (4 * H, D + H), jnp.float32),
        "lang_w_hh": s * jax.random.normal(ks[11], (4 * H, H), jnp.float32),
        "lang_b_ih": s * jax.random.normal(ks[12], (4 * H,), jnp.float32),
        "lang_b_hh": s * jax.random.normal(ks[13], (4 * H,), jnp.float32),
    }

    tol = dict(atol=3e-2, rtol=3e-2)   # bf16 matmul operands, f32 accumulation

    # ---- 1) global_img_in_attn_lstm=True, single grid step -----------------
    out_ref, st_ref = _reference(embedded_word, fc_feats, weighted_pool_feat,
                                 attn_conv, state, params,
                                 global_img_in_attn_lstm=True)
    prep = prepare_decoder_params(params, embed_dim=E, fc_dim=F)
    out, new_state = attened_decoder_core(embedded_word, fc_feats,
                                          weighted_pool_feat, attn_conv,
                                          state, prep)
    jax.block_until_ready(out)
    jax.block_until_ready(new_state)
    assert jnp.allclose(out, out_ref, **tol)
    assert jnp.allclose(new_state[0], st_ref[0], **tol)
    assert jnp.allclose(new_state[1], st_ref[1], **tol)

    # ---- 2) global_img_in_attn_lstm=False variant ---------------------------
    params_nofc = dict(params)
    params_nofc["att_w_ih"] = s * jax.random.normal(ks[14], (4 * H, H + E),
                                                    jnp.float32)
    out_ref2, st_ref2 = _reference(embedded_word, fc_feats, weighted_pool_feat,
                                   attn_conv, state, params_nofc,
                                   global_img_in_attn_lstm=False)
    prep2 = prepare_decoder_params(params_nofc, embed_dim=E, fc_dim=None)
    out2, new_state2 = attened_decoder_core(embedded_word, fc_feats,
                                            weighted_pool_feat, attn_conv,
                                            state, prep2)
    jax.block_until_ready(out2)
    assert jnp.allclose(out2, out_ref2, **tol)
    assert jnp.allclose(new_state2[0], st_ref2[0], **tol)
    assert jnp.allclose(new_state2[1], st_ref2[1], **tol)

    # ---- 3) multi-step batch grid (v7x-style two-TensorCore split) ----------
    B2 = 16
    emb_b = jax.random.normal(ks[15], (B2, E), jnp.float32)
    fc_b = jax.random.normal(ks[16], (B2, F), jnp.float32)
    wpf_b = jax.random.normal(ks[17], (B2, D), jnp.float32)
    ac_b = jax.random.normal(ks[18], (B2, D), jnp.float32)
    st_b = (jax.random.normal(ks[19], (2, B2, H), jnp.float32),
            jax.random.normal(ks[20], (2, B2, H), jnp.float32))
    out_ref3, st_ref3 = _reference(emb_b, fc_b, wpf_b, ac_b, st_b, params,
                                   global_img_in_attn_lstm=True)
    out3, new_state3 = attened_decoder_core(emb_b, fc_b, wpf_b, ac_b, st_b,
                                            prep, batch_block=8)
    jax.block_until_ready(out3)
    assert jnp.allclose(out3, out_ref3, **tol)
    assert jnp.allclose(new_state3[0], st_ref3[0], **tol)
    assert jnp.allclose(new_state3[1], st_ref3[1], **tol)

    print("KERNEL_OK")
</pallas_src>

<mosaic_0001>
module attributes {stable_mosaic.version = 11 : i64} {
  func.func @_decoder_core_kernel(%arg0: i32, %arg1: memref<8x128xf32, #tpu.memory_space<vmem>>, %arg2: memref<8x32xf32, #tpu.memory_space<vmem>>, %arg3: memref<8x32xf32, #tpu.memory_space<vmem>>, %arg4: memref<8x32xf32, #tpu.memory_space<vmem>>, %arg5: memref<8x32xf32, #tpu.memory_space<vmem>>, %arg6: memref<32x128xbf16, #tpu.memory_space<vmem>>, %arg7: memref<32x128xbf16, #tpu.memory_space<vmem>>, %arg8: memref<32x128xbf16, #tpu.memory_space<vmem>>, %arg9: memref<32x128xbf16, #tpu.memory_space<vmem>>, %arg10: memref<1x128xbf16, #tpu.memory_space<vmem>>, %arg11: memref<32x128xbf16, #tpu.memory_space<vmem>>, %arg12: memref<32x128xbf16, #tpu.memory_space<vmem>>, %arg13: memref<32x128xbf16, #tpu.memory_space<vmem>>, %arg14: memref<1x128xbf16, #tpu.memory_space<vmem>>, %arg15: memref<8x128xf32, #tpu.memory_space<vmem>>) attributes {dimension_semantics = [#tpu.dimension_semantics<parallel>], iteration_bounds = array<i64: 1>, scalar_prefetch = 0 : i64, scratch_operands = 0 : i64, tpu.core_type = #tpu.core_type<tc>, window_params = [{transform_indices = @transform_0, window_bounds = array<i64: 8, 128>}, {transform_indices = @transform_1, window_bounds = array<i64: 8, 32>}, {transform_indices = @transform_2, window_bounds = array<i64: 8, 32>}, {transform_indices = @transform_3, window_bounds = array<i64: 8, 32>}, {transform_indices = @transform_4, window_bounds = array<i64: 8, 32>}, {pipeline_mode = #tpu.pipeline_mode<synchronous>, transform_indices = @transform_5, window_bounds = array<i64: 32, 128>}, {pipeline_mode = #tpu.pipeline_mode<synchronous>, transform_indices = @transform_6, window_bounds = array<i64: 32, 128>}, {pipeline_mode = #tpu.pipeline_mode<synchronous>, transform_indices = @transform_7, window_bounds = array<i64: 32, 128>}, {pipeline_mode = #tpu.pipeline_mode<synchronous>, transform_indices = @transform_8, window_bounds = array<i64: 32, 128>}, {pipeline_mode = #tpu.pipeline_mode<synchronous>, transform_indices = @transform_9, window_bounds = array<i64: 1, 128>}, {pipeline_mode = #tpu.pipeline_mode<synchronous>, transform_indices = @transform_10, window_bounds = array<i64: 32, 128>}, {pipeline_mode = #tpu.pipeline_mode<synchronous>, transform_indices = @transform_11, window_bounds = array<i64: 32, 128>}, {pipeline_mode = #tpu.pipeline_mode<synchronous>, transform_indices = @transform_12, window_bounds = array<i64: 32, 128>}, {pipeline_mode = #tpu.pipeline_mode<synchronous>, transform_indices = @transform_13, window_bounds = array<i64: 1, 128>}, {transform_indices = @transform_14, window_bounds = array<i64: 8, 128>}]} {
    %c0 = arith.constant 0 : index
    %c0_0 = arith.constant 0 : index
    %0 = vector.load %arg1[%c0, %c0_0] : memref<8x128xf32, #tpu.memory_space<vmem>>, vector<8x128xf32>
    %1 = vector.extract_strided_slice %0 {offsets = [0, 0], sizes = [8, 32], strides = [1, 1]} : vector<8x128xf32> to vector<8x32xf32>
    %2 = vector.extract_strided_slice %0 {offsets = [0, 32], sizes = [8, 32], strides = [1, 1]} : vector<8x128xf32> to vector<8x32xf32>
    %3 = vector.extract_strided_slice %0 {offsets = [0, 64], sizes = [8, 32], strides = [1, 1]} : vector<8x128xf32> to vector<8x32xf32>
    %4 = vector.extract_strided_slice %0 {offsets = [0, 96], sizes = [8, 32], strides = [1, 1]} : vector<8x128xf32> to vector<8x32xf32>
    %5 = arith.truncf %1 : vector<8x32xf32> to vector<8x32xbf16>
    %6 = arith.truncf %2 : vector<8x32xf32> to vector<8x32xbf16>
    %c0_1 = arith.constant 0 : index
    %c0_2 = arith.constant 0 : index
    %7 = vector.load %arg6[%c0_1, %c0_2] : memref<32x128xbf16, #tpu.memory_space<vmem>>, vector<32x128xbf16>
    %cst = arith.constant dense<0.000000e+00> : vector<8x128xf32>
    %8 = tpu.matmul %6, %7, %cst {dimension_numbers = #tpu.dot_dimension_numbers<[1], [0], [0], [1], [0, 0, 1, 1], [], []>} : vector<8x32xbf16>, vector<32x128xbf16>, vector<8x128xf32> -> vector<8x128xf32>
    %c0_3 = arith.constant 0 : index
    %c0_4 = arith.constant 0 : index
    %9 = vector.load %arg9[%c0_3, %c0_4] : memref<32x128xbf16, #tpu.memory_space<vmem>>, vector<32x128xbf16>
    %cst_5 = arith.constant dense<0.000000e+00> : vector<8x128xf32>
    %10 = tpu.matmul %5, %9, %cst_5 {dimension_numbers = #tpu.dot_dimension_numbers<[1], [0], [0], [1], [0, 0, 1, 1], [], []>} : vector<8x32xbf16>, vector<32x128xbf16>, vector<8x128xf32> -> vector<8x128xf32>
    %11 = arith.addf %8, %10 : vector<8x128xf32>
    %c0_6 = arith.constant 0 : index
    %c0_7 = arith.constant 0 : index
    %12 = vector.load %arg3[%c0_6, %c0_7] : memref<8x32xf32, #tpu.memory_space<vmem>>, vector<8x32xf32>
    %13 = arith.truncf %12 : vector<8x32xf32> to vector<8x32xbf16>
    %c0_8 = arith.constant 0 : index
    %c0_9 = arith.constant 0 : index
    %14 = vector.load %arg8[%c0_8, %c0_9] : memref<32x128xbf16, #tpu.memory_space<vmem>>, vector<32x128xbf16>
    %cst_10 = arith.constant dense<0.000000e+00> : vector<8x128xf32>
    %15 = tpu.matmul %13, %14, %cst_10 {dimension_numbers = #tpu.dot_dimension_numbers<[1], [0], [0], [1], [0, 0, 1, 1], [], []>} : vector<8x32xbf16>, vector<32x128xbf16>, vector<8x128xf32> -> vector<8x128xf32>
    %16 = arith.addf %11, %15 : vector<8x128xf32>
    %c0_11 = arith.constant 0 : index
    %c0_12 = arith.constant 0 : index
    %17 = vector.load %arg2[%c0_11, %c0_12] : memref<8x32xf32, #tpu.memory_space<vmem>>, vector<8x32xf32>
    %18 = arith.truncf %17 : vector<8x32xf32> to vector<8x32xbf16>
    %c0_13 = arith.constant 0 : index
    %c0_14 = arith.constant 0 : index
    %19 = vector.load %arg7[%c0_13, %c0_14] : memref<32x128xbf16, #tpu.memory_space<vmem>>, vector<32x128xbf16>
    %cst_15 = arith.constant dense<0.000000e+00> : vector<8x128xf32>
    %20 = tpu.matmul %18, %19, %cst_15 {dimension_numbers = #tpu.dot_dimension_numbers<[1], [0], [0], [1], [0, 0, 1, 1], [], []>} : vector<8x32xbf16>, vector<32x128xbf16>, vector<8x128xf32> -> vector<8x128xf32>
    %21 = arith.addf %16, %20 : vector<8x128xf32>
    %c0_16 = arith.constant 0 : index
    %c0_17 = arith.constant 0 : index
    %22 = vector.load %arg10[%c0_16, %c0_17] : memref<1x128xbf16, #tpu.memory_space<vmem>>, vector<1x128xbf16>
    %23 = arith.extf %22 : vector<1x128xbf16> to vector<1x128xf32>
    %24 = vector.broadcast %23 : vector<1x128xf32> to vector<8x128xf32>
    %25 = arith.addf %21, %24 : vector<8x128xf32>
    %c0_18 = arith.constant 0 : index
    %c0_19 = arith.constant 0 : index
    %26 = vector.load %arg4[%c0_18, %c0_19] : memref<8x32xf32, #tpu.memory_space<vmem>>, vector<8x32xf32>
    %c0_20 = arith.constant 0 : index
    %c0_21 = arith.constant 0 : index
    %27 = vector.load %arg5[%c0_20, %c0_21] : memref<8x32xf32, #tpu.memory_space<vmem>>, vector<8x32xf32>
    %28 = arith.addf %26, %27 : vector<8x32xf32>
    %29 = arith.truncf %28 : vector<8x32xf32> to vector<8x32xbf16>
    %c0_22 = arith.constant 0 : index
    %c0_23 = arith.constant 0 : index
    %30 = vector.load %arg11[%c0_22, %c0_23] : memref<32x128xbf16, #tpu.memory_space<vmem>>, vector<32x128xbf16>
    %cst_24 = arith.constant dense<0.000000e+00> : vector<8x128xf32>
    %31 = tpu.matmul %29, %30, %cst_24 {dimension_numbers = #tpu.dot_dimension_numbers<[1], [0], [0], [1], [0, 0, 1, 1], [], []>} : vector<8x32xbf16>, vector<32x128xbf16>, vector<8x128xf32> -> vector<8x128xf32>
    %c0_25 = arith.constant 0 : index
    %c0_26 = arith.constant 0 : index
    %32 = vector.load %arg13[%c0_25, %c0_26] : memref<32x128xbf16, #tpu.memory_space<vmem>>, vector<32x128xbf16>
    %cst_27 = arith.constant dense<0.000000e+00> : vector<8x128xf32>
    %33 = tpu.matmul %6, %32, %cst_27 {dimension_numbers = #tpu.dot_dimension_numbers<[1], [0], [0], [1], [0, 0, 1, 1], [], []>} : vector<8x32xbf16>, vector<32x128xbf16>, vector<8x128xf32> -> vector<8x128xf32>
    %34 = arith.addf %31, %33 : vector<8x128xf32>
    %c0_28 = arith.constant 0 : index
    %c0_29 = arith.constant 0 : index
    %35 = vector.load %arg14[%c0_28, %c0_29] : memref<1x128xbf16, #tpu.memory_space<vmem>>, vector<1x128xbf16>
    %36 = arith.extf %35 : vector<1x128xbf16> to vector<1x128xf32>
    %37 = vector.broadcast %36 : vector<1x128xf32> to vector<8x128xf32>
    %38 = arith.addf %34, %37 : vector<8x128xf32>
    %39 = vector.extract_strided_slice %25 {offsets = [0, 0], sizes = [8, 96], strides = [1, 1]} : vector<8x128xf32> to vector<8x96xf32>
    %40 = arith.negf %39 : vector<8x96xf32>
    %41 = math.exp %40 : vector<8x96xf32>
    %cst_30 = arith.constant 1.000000e+00 : f32
    %42 = vector.broadcast %cst_30 : f32 to vector<8x96xf32>
    %43 = arith.addf %42, %41 : vector<8x96xf32>
    %44 = arith.divf %42, %43 : vector<8x96xf32>
    %45 = vector.extract_strided_slice %44 {offsets = [0, 0], sizes = [8, 32], strides = [1, 1]} : vector<8x96xf32> to vector<8x32xf32>
    %46 = vector.extract_strided_slice %44 {offsets = [0, 32], sizes = [8, 32], strides = [1, 1]} : vector<8x96xf32> to vector<8x32xf32>
    %47 = vector.extract_strided_slice %44 {offsets = [0, 64], sizes = [8, 32], strides = [1, 1]} : vector<8x96xf32> to vector<8x32xf32>
    %48 = vector.extract_strided_slice %25 {offsets = [0, 96], sizes = [8, 32], strides = [1, 1]} : vector<8x128xf32> to vector<8x32xf32>
    %49 = math.tanh %48 : vector<8x32xf32>
    %50 = arith.mulf %46, %3 : vector<8x32xf32>
    %51 = arith.mulf %45, %49 : vector<8x32xf32>
    %52 = arith.addf %50, %51 : vector<8x32xf32>
    %53 = math.tanh %52 : vector<8x32xf32>
    %54 = arith.mulf %47, %53 : vector<8x32xf32>
    %55 = arith.truncf %54 : vector<8x32xf32> to vector<8x32xbf16>
    %c0_31 = arith.constant 0 : index
    %c0_32 = arith.constant 0 : index
    %56 = vector.load %arg12[%c0_31, %c0_32] : memref<32x128xbf16, #tpu.memory_space<vmem>>, vector<32x128xbf16>
    %cst_33 = arith.constant dense<0.000000e+00> : vector<8x128xf32>
    %57 = tpu.matmul %55, %56, %cst_33 {dimension_numbers = #tpu.dot_dimension_numbers<[1], [0], [0], [1], [0, 0, 1, 1], [], []>} : vector<8x32xbf16>, vector<32x128xbf16>, vector<8x128xf32> -> vector<8x128xf32>
    %58 = arith.addf %38, %57 : vector<8x128xf32>
    %59 = vector.extract_strided_slice %58 {offsets = [0, 0], sizes = [8, 96], strides = [1, 1]} : vector<8x128xf32> to vector<8x96xf32>
    %60 = arith.negf %59 : vector<8x96xf32>
    %61 = math.exp %60 : vector<8x96xf32>
    %cst_34 = arith.constant 1.000000e+00 : f32
    %62 = vector.broadcast %cst_34 : f32 to vector<8x96xf32>
    %63 = arith.addf %62, %61 : vector<8x96xf32>
    %64 = arith.divf %62, %63 : vector<8x96xf32>
    %65 = vector.extract_strided_slice %64 {offsets = [0, 0], sizes = [8, 32], strides = [1, 1]} : vector<8x96xf32> to vector<8x32xf32>
    %66 = vector.extract_strided_slice %64 {offsets = [0, 32], sizes = [8, 32], strides = [1, 1]} : vector<8x96xf32> to vector<8x32xf32>
    %67 = vector.extract_strided_slice %64 {offsets = [0, 64], sizes = [8, 32], strides = [1, 1]} : vector<8x96xf32> to vector<8x32xf32>
    %68 = vector.extract_strided_slice %58 {offsets = [0, 96], sizes = [8, 32], strides = [1, 1]} : vector<8x128xf32> to vector<8x32xf32>
    %69 = math.tanh %68 : vector<8x32xf32>
    %70 = arith.mulf %66, %4 : vector<8x32xf32>
    %71 = arith.mulf %65, %69 : vector<8x32xf32>
    %72 = arith.addf %70, %71 : vector<8x32xf32>
    %73 = math.tanh %72 : vector<8x32xf32>
    %74 = arith.mulf %67, %73 : vector<8x32xf32>
    %c0_35 = arith.constant 0 : index
    %c0_36 = arith.constant 0 : index
    %75 = vector.load %arg15[%c0_35, %c0_36] : memref<8x128xf32, #tpu.memory_space<vmem>>, vector<8x32xf32>
    tpu.vector_store %arg15[%c0_35, %c0_36], %54 {strides = array<i32>} : memref<8x128xf32, #tpu.memory_space<vmem>>, vector<8x32xf32>,
    %c0_37 = arith.constant 0 : index
    %c32 = arith.constant 32 : index
    %76 = vector.load %arg15[%c0_37, %c32] : memref<8x128xf32, #tpu.memory_space<vmem>>, vector<8x32xf32>
    tpu.vector_store %arg15[%c0_37, %c32], %74 {strides = array<i32>} : memref<8x128xf32, #tpu.memory_space<vmem>>, vector<8x32xf32>,
    %c0_38 = arith.constant 0 : index
    %c64 = arith.constant 64 : index
    %77 = vector.load %arg15[%c0_38, %c64] : memref<8x128xf32, #tpu.memory_space<vmem>>, vector<8x32xf32>
    tpu.vector_store %arg15[%c0_38, %c64], %52 {strides = array<i32>} : memref<8x128xf32, #tpu.memory_space<vmem>>, vector<8x32xf32>,
    %c0_39 = arith.constant 0 : index
    %c96 = arith.constant 96 : index
    %78 = vector.load %arg15[%c0_39, %c96] : memref<8x128xf32, #tpu.memory_space<vmem>>, vector<8x32xf32>
    tpu.vector_store %arg15[%c0_39, %c96], %72 {strides = array<i32>} : memref<8x128xf32, #tpu.memory_space<vmem>>, vector<8x32xf32>,
    return
  }
  func.func @transform_0(%arg0: i32) -> (i32, i32) {
    %c0_i32 = arith.constant 0 : i32
    %c0_i32_0 = arith.constant 0 : i32
    return %arg0, %c0_i32 : i32, i32
  }
  func.func @transform_1(%arg0: i32) -> (i32, i32) {
    %c0_i32 = arith.constant 0 : i32
    %c0_i32_0 = arith.constant 0 : i32
    return %arg0, %c0_i32 : i32, i32
  }
  func.func @transform_2(%arg0: i32) -> (i32, i32) {
    %c0_i32 = arith.constant 0 : i32
    %c0_i32_0 = arith.constant 0 : i32
    return %arg0, %c0_i32 : i32, i32
  }
  func.func @transform_3(%arg0: i32) -> (i32, i32) {
    %c0_i32 = arith.constant 0 : i32
    %c0_i32_0 = arith.constant 0 : i32
    return %arg0, %c0_i32 : i32, i32
  }
  func.func @transform_4(%arg0: i32) -> (i32, i32) {
    %c0_i32 = arith.constant 0 : i32
    %c0_i32_0 = arith.constant 0 : i32
    return %arg0, %c0_i32 : i32, i32
  }
  func.func @transform_5(%arg0: i32) -> (i32, i32) {
    %c0_i32 = arith.constant 0 : i32
    %c0_i32_0 = arith.constant 0 : i32
    %c0_i32_1 = arith.constant 0 : i32
    return %c0_i32, %c0_i32_0 : i32, i32
  }
  func.func @transform_6(%arg0: i32) -> (i32, i32) {
    %c0_i32 = arith.constant 0 : i32
    %c0_i32_0 = arith.constant 0 : i32
    %c0_i32_1 = arith.constant 0 : i32
    return %c0_i32, %c0_i32_0 : i32, i32
  }
  func.func @transform_7(%arg0: i32) -> (i32, i32) {
    %c0_i32 = arith.constant 0 : i32
    %c0_i32_0 = arith.constant 0 : i32
    %c0_i32_1 = arith.constant 0 : i32
    return %c0_i32, %c0_i32_0 : i32, i32
  }
  func.func @transform_8(%arg0: i32) -> (i32, i32) {
    %c0_i32 = arith.constant 0 : i32
    %c0_i32_0 = arith.constant 0 : i32
    %c0_i32_1 = arith.constant 0 : i32
    return %c0_i32, %c0_i32_0 : i32, i32
  }
  func.func @transform_9(%arg0: i32) -> (i32, i32) {
    %c0_i32 = arith.constant 0 : i32
    %c0_i32_0 = arith.constant 0 : i32
    %c0_i32_1 = arith.constant 0 : i32
    return %c0_i32, %c0_i32_0 : i32, i32
  }
  func.func @transform_10(%arg0: i32) -> (i32, i32) {
    %c0_i32 = arith.constant 0 : i32
    %c0_i32_0 = arith.constant 0 : i32
    %c0_i32_1 = arith.constant 0 : i32
    return %c0_i32, %c0_i32_0 : i32, i32
  }
  func.func @transform_11(%arg0: i32) -> (i32, i32) {
    %c0_i32 = arith.constant 0 : i32
    %c0_i32_0 = arith.constant 0 : i32
    %c0_i32_1 = arith.constant 0 : i32
    return %c0_i32, %c0_i32_0 : i32, i32
  }
  func.func @transform_12(%arg0: i32) -> (i32, i32) {
    %c0_i32 = arith.constant 0 : i32
    %c0_i32_0 = arith.constant 0 : i32
    %c0_i32_1 = arith.constant 0 : i32
    return %c0_i32, %c0_i32_0 : i32, i32
  }
  func.func @transform_13(%arg0: i32) -> (i32, i32) {
    %c0_i32 = arith.constant 0 : i32
    %c0_i32_0 = arith.constant 0 : i32
    %c0_i32_1 = arith.constant 0 : i32
    return %c0_i32, %c0_i32_0 : i32, i32
  }
  func.func @transform_14(%arg0: i32) -> (i32, i32) {
    %c0_i32 = arith.constant 0 : i32
    %c0_i32_0 = arith.constant 0 : i32
    return %arg0, %c0_i32 : i32, i32
  }
}

module attributes {stable_mosaic.version = 11 : i64} {
  func.func @_decoder_core_kernel(%arg0: i32, %arg1: memref<8x128xf32, #tpu.memory_space<vmem>>, %arg2: memref<8x32xf32, #tpu.memory_space<vmem>>, %arg3: memref<8x32xf32, #tpu.memory_space<vmem>>, %arg4: memref<8x32xf32, #tpu.memory_space<vmem>>, %arg5: memref<8x32xf32, #tpu.memory_space<vmem>>, %arg6: memref<32x128xbf16, #tpu.memory_space<vmem>>, %arg7: memref<32x128xbf16, #tpu.memory_space<vmem>>, %arg8: memref<32x128xbf16, #tpu.memory_space<vmem>>, %arg9: memref<32x128xbf16, #tpu.memory_space<vmem>>, %arg10: memref<1x128xbf16, #tpu.memory_space<vmem>>, %arg11: memref<32x128xbf16, #tpu.memory_space<vmem>>, %arg12: memref<32x128xbf16, #tpu.memory_space<vmem>>, %arg13: memref<32x128xbf16, #tpu.memory_space<vmem>>, %arg14: memref<1x128xbf16, #tpu.memory_space<vmem>>, %arg15: memref<8x128xf32, #tpu.memory_space<vmem>>) attributes {dimension_semantics = [#tpu.dimension_semantics<parallel>], iteration_bounds = array<i64: 1>, scalar_prefetch = 0 : i64, scratch_operands = 0 : i64, tpu.core_type = #tpu.core_type<tc>, window_params = [{transform_indices = @transform_0, window_bounds = array<i64: 8, 128>}, {transform_indices = @transform_1, window_bounds = array<i64: 8, 32>}, {transform_indices = @transform_2, window_bounds = array<i64: 8, 32>}, {transform_indices = @transform_3, window_bounds = array<i64: 8, 32>}, {transform_indices = @transform_4, window_bounds = array<i64: 8, 32>}, {pipeline_mode = #tpu.pipeline_mode<synchronous>, transform_indices = @transform_5, window_bounds = array<i64: 32, 128>}, {pipeline_mode = #tpu.pipeline_mode<synchronous>, transform_indices = @transform_6, window_bounds = array<i64: 32, 128>}, {pipeline_mode = #tpu.pipeline_mode<synchronous>, transform_indices = @transform_7, window_bounds = array<i64: 32, 128>}, {pipeline_mode = #tpu.pipeline_mode<synchronous>, transform_indices = @transform_8, window_bounds = array<i64: 32, 128>}, {pipeline_mode = #tpu.pipeline_mode<synchronous>, transform_indices = @transform_9, window_bounds = array<i64: 1, 128>}, {pipeline_mode = #tpu.pipeline_mode<synchronous>, transform_indices = @transform_10, window_bounds = array<i64: 32, 128>}, {pipeline_mode = #tpu.pipeline_mode<synchronous>, transform_indices = @transform_11, window_bounds = array<i64: 32, 128>}, {pipeline_mode = #tpu.pipeline_mode<synchronous>, transform_indices = @transform_12, window_bounds = array<i64: 32, 128>}, {pipeline_mode = #tpu.pipeline_mode<synchronous>, transform_indices = @transform_13, window_bounds = array<i64: 1, 128>}, {transform_indices = @transform_14, window_bounds = array<i64: 8, 128>}]} {
    %c0 = arith.constant 0 : index
    %c0_0 = arith.constant 0 : index
    %0 = vector.load %arg1[%c0, %c0_0] : memref<8x128xf32, #tpu.memory_space<vmem>>, vector<8x128xf32>
    %1 = vector.extract_strided_slice %0 {offsets = [0, 0], sizes = [8, 32], strides = [1, 1]} : vector<8x128xf32> to vector<8x32xf32>
    %2 = vector.extract_strided_slice %0 {offsets = [0, 32], sizes = [8, 32], strides = [1, 1]} : vector<8x128xf32> to vector<8x32xf32>
    %3 = vector.extract_strided_slice %0 {offsets = [0, 64], sizes = [8, 32], strides = [1, 1]} : vector<8x128xf32> to vector<8x32xf32>
    %4 = vector.extract_strided_slice %0 {offsets = [0, 96], sizes = [8, 32], strides = [1, 1]} : vector<8x128xf32> to vector<8x32xf32>
    %5 = arith.truncf %1 : vector<8x32xf32> to vector<8x32xbf16>
    %6 = arith.truncf %2 : vector<8x32xf32> to vector<8x32xbf16>
    %c0_1 = arith.constant 0 : index
    %c0_2 = arith.constant 0 : index
    %7 = vector.load %arg6[%c0_1, %c0_2] : memref<32x128xbf16, #tpu.memory_space<vmem>>, vector<32x128xbf16>
    %cst = arith.constant dense<0.000000e+00> : vector<8x128xf32>
    %8 = tpu.matmul %6, %7, %cst {dimension_numbers = #tpu.dot_dimension_numbers<[1], [0], [0], [1], [0, 0, 1, 1], [], []>} : vector<8x32xbf16>, vector<32x128xbf16>, vector<8x128xf32> -> vector<8x128xf32>
    %c0_3 = arith.constant 0 : index
    %c0_4 = arith.constant 0 : index
    %9 = vector.load %arg9[%c0_3, %c0_4] : memref<32x128xbf16, #tpu.memory_space<vmem>>, vector<32x128xbf16>
    %cst_5 = arith.constant dense<0.000000e+00> : vector<8x128xf32>
    %10 = tpu.matmul %5, %9, %cst_5 {dimension_numbers = #tpu.dot_dimension_numbers<[1], [0], [0], [1], [0, 0, 1, 1], [], []>} : vector<8x32xbf16>, vector<32x128xbf16>, vector<8x128xf32> -> vector<8x128xf32>
    %11 = arith.addf %8, %10 : vector<8x128xf32>
    %c0_6 = arith.constant 0 : index
    %c0_7 = arith.constant 0 : index
    %12 = vector.load %arg3[%c0_6, %c0_7] : memref<8x32xf32, #tpu.memory_space<vmem>>, vector<8x32xf32>
    %13 = arith.truncf %12 : vector<8x32xf32> to vector<8x32xbf16>
    %c0_8 = arith.constant 0 : index
    %c0_9 = arith.constant 0 : index
    %14 = vector.load %arg8[%c0_8, %c0_9] : memref<32x128xbf16, #tpu.memory_space<vmem>>, vector<32x128xbf16>
    %cst_10 = arith.constant dense<0.000000e+00> : vector<8x128xf32>
    %15 = tpu.matmul %13, %14, %cst_10 {dimension_numbers = #tpu.dot_dimension_numbers<[1], [0], [0], [1], [0, 0, 1, 1], [], []>} : vector<8x32xbf16>, vector<32x128xbf16>, vector<8x128xf32> -> vector<8x128xf32>
    %16 = arith.addf %11, %15 : vector<8x128xf32>
    %c0_11 = arith.constant 0 : index
    %c0_12 = arith.constant 0 : index
    %17 = vector.load %arg2[%c0_11, %c0_12] : memref<8x32xf32, #tpu.memory_space<vmem>>, vector<8x32xf32>
    %18 = arith.truncf %17 : vector<8x32xf32> to vector<8x32xbf16>
    %c0_13 = arith.constant 0 : index
    %c0_14 = arith.constant 0 : index
    %19 = vector.load %arg7[%c0_13, %c0_14] : memref<32x128xbf16, #tpu.memory_space<vmem>>, vector<32x128xbf16>
    %cst_15 = arith.constant dense<0.000000e+00> : vector<8x128xf32>
    %20 = tpu.matmul %18, %19, %cst_15 {dimension_numbers = #tpu.dot_dimension_numbers<[1], [0], [0], [1], [0, 0, 1, 1], [], []>} : vector<8x32xbf16>, vector<32x128xbf16>, vector<8x128xf32> -> vector<8x128xf32>
    %21 = arith.addf %16, %20 : vector<8x128xf32>
    %c0_16 = arith.constant 0 : index
    %c0_17 = arith.constant 0 : index
    %22 = vector.load %arg10[%c0_16, %c0_17] : memref<1x128xbf16, #tpu.memory_space<vmem>>, vector<1x128xbf16>
    %23 = arith.extf %22 : vector<1x128xbf16> to vector<1x128xf32>
    %24 = vector.broadcast %23 : vector<1x128xf32> to vector<8x128xf32>
    %25 = arith.addf %21, %24 : vector<8x128xf32>
    %c0_18 = arith.constant 0 : index
    %c0_19 = arith.constant 0 : index
    %26 = vector.load %arg4[%c0_18, %c0_19] : memref<8x32xf32, #tpu.memory_space<vmem>>, vector<8x32xf32>
    %c0_20 = arith.constant 0 : index
    %c0_21 = arith.constant 0 : index
    %27 = vector.load %arg5[%c0_20, %c0_21] : memref<8x32xf32, #tpu.memory_space<vmem>>, vector<8x32xf32>
    %28 = arith.addf %26, %27 : vector<8x32xf32>
    %29 = arith.truncf %28 : vector<8x32xf32> to vector<8x32xbf16>
    %c0_22 = arith.constant 0 : index
    %c0_23 = arith.constant 0 : index
    %30 = vector.load %arg11[%c0_22, %c0_23] : memref<32x128xbf16, #tpu.memory_space<vmem>>, vector<32x128xbf16>
    %cst_24 = arith.constant dense<0.000000e+00> : vector<8x128xf32>
    %31 = tpu.matmul %29, %30, %cst_24 {dimension_numbers = #tpu.dot_dimension_numbers<[1], [0], [0], [1], [0, 0, 1, 1], [], []>} : vector<8x32xbf16>, vector<32x128xbf16>, vector<8x128xf32> -> vector<8x128xf32>
    %c0_25 = arith.constant 0 : index
    %c0_26 = arith.constant 0 : index
    %32 = vector.load %arg13[%c0_25, %c0_26] : memref<32x128xbf16, #tpu.memory_space<vmem>>, vector<32x128xbf16>
    %cst_27 = arith.constant dense<0.000000e+00> : vector<8x128xf32>
    %33 = tpu.matmul %6, %32, %cst_27 {dimension_numbers = #tpu.dot_dimension_numbers<[1], [0], [0], [1], [0, 0, 1, 1], [], []>} : vector<8x32xbf16>, vector<32x128xbf16>, vector<8x128xf32> -> vector<8x128xf32>
    %34 = arith.addf %31, %33 : vector<8x128xf32>
    %c0_28 = arith.constant 0 : index
    %c0_29 = arith.constant 0 : index
    %35 = vector.load %arg14[%c0_28, %c0_29] : memref<1x128xbf16, #tpu.memory_space<vmem>>, vector<1x128xbf16>
    %36 = arith.extf %35 : vector<1x128xbf16> to vector<1x128xf32>
    %37 = vector.broadcast %36 : vector<1x128xf32> to vector<8x128xf32>
    %38 = arith.addf %34, %37 : vector<8x128xf32>
    %39 = vector.extract_strided_slice %25 {offsets = [0, 0], sizes = [8, 96], strides = [1, 1]} : vector<8x128xf32> to vector<8x96xf32>
    %40 = arith.negf %39 : vector<8x96xf32>
    %41 = math.exp %40 : vector<8x96xf32>
    %cst_30 = arith.constant 1.000000e+00 : f32
    %42 = vector.broadcast %cst_30 : f32 to vector<8x96xf32>
    %43 = arith.addf %42, %41 : vector<8x96xf32>
    %44 = arith.divf %42, %43 : vector<8x96xf32>
    %45 = vector.extract_strided_slice %44 {offsets = [0, 0], sizes = [8, 32], strides = [1, 1]} : vector<8x96xf32> to vector<8x32xf32>
    %46 = vector.extract_strided_slice %44 {offsets = [0, 32], sizes = [8, 32], strides = [1, 1]} : vector<8x96xf32> to vector<8x32xf32>
    %47 = vector.extract_strided_slice %44 {offsets = [0, 64], sizes = [8, 32], strides = [1, 1]} : vector<8x96xf32> to vector<8x32xf32>
    %48 = vector.extract_strided_slice %25 {offsets = [0, 96], sizes = [8, 32], strides = [1, 1]} : vector<8x128xf32> to vector<8x32xf32>
    %49 = math.tanh %48 : vector<8x32xf32>
    %50 = arith.mulf %46, %3 : vector<8x32xf32>
    %51 = arith.mulf %45, %49 : vector<8x32xf32>
    %52 = arith.addf %50, %51 : vector<8x32xf32>
    %53 = math.tanh %52 : vector<8x32xf32>
    %54 = arith.mulf %47, %53 : vector<8x32xf32>
    %55 = arith.truncf %54 : vector<8x32xf32> to vector<8x32xbf16>
    %c0_31 = arith.constant 0 : index
    %c0_32 = arith.constant 0 : index
    %56 = vector.load %arg12[%c0_31, %c0_32] : memref<32x128xbf16, #tpu.memory_space<vmem>>, vector<32x128xbf16>
    %cst_33 = arith.constant dense<0.000000e+00> : vector<8x128xf32>
    %57 = tpu.matmul %55, %56, %cst_33 {dimension_numbers = #tpu.dot_dimension_numbers<[1], [0], [0], [1], [0, 0, 1, 1], [], []>} : vector<8x32xbf16>, vector<32x128xbf16>, vector<8x128xf32> -> vector<8x128xf32>
    %58 = arith.addf %38, %57 : vector<8x128xf32>
    %59 = vector.extract_strided_slice %58 {offsets = [0, 0], sizes = [8, 96], strides = [1, 1]} : vector<8x128xf32> to vector<8x96xf32>
    %60 = arith.negf %59 : vector<8x96xf32>
    %61 = math.exp %60 : vector<8x96xf32>
    %cst_34 = arith.constant 1.000000e+00 : f32
    %62 = vector.broadcast %cst_34 : f32 to vector<8x96xf32>
    %63 = arith.addf %62, %61 : vector<8x96xf32>
    %64 = arith.divf %62, %63 : vector<8x96xf32>
    %65 = vector.extract_strided_slice %64 {offsets = [0, 0], sizes = [8, 32], strides = [1, 1]} : vector<8x96xf32> to vector<8x32xf32>
    %66 = vector.extract_strided_slice %64 {offsets = [0, 32], sizes = [8, 32], strides = [1, 1]} : vector<8x96xf32> to vector<8x32xf32>
    %67 = vector.extract_strided_slice %64 {offsets = [0, 64], sizes = [8, 32], strides = [1, 1]} : vector<8x96xf32> to vector<8x32xf32>
    %68 = vector.extract_strided_slice %58 {offsets = [0, 96], sizes = [8, 32], strides = [1, 1]} : vector<8x128xf32> to vector<8x32xf32>
    %69 = math.tanh %68 : vector<8x32xf32>
    %70 = arith.mulf %66, %4 : vector<8x32xf32>
    %71 = arith.mulf %65, %69 : vector<8x32xf32>
    %72 = arith.addf %70, %71 : vector<8x32xf32>
    %73 = math.tanh %72 : vector<8x32xf32>
    %74 = arith.mulf %67, %73 : vector<8x32xf32>
    %c0_35 = arith.constant 0 : index
    %c0_36 = arith.constant 0 : index
    %75 = vector.load %arg15[%c0_35, %c0_36] : memref<8x128xf32, #tpu.memory_space<vmem>>, vector<8x32xf32>
    tpu.vector_store %arg15[%c0_35, %c0_36], %54 {strides = array<i32>} : memref<8x128xf32, #tpu.memory_space<vmem>>, vector<8x32xf32>,
    %c0_37 = arith.constant 0 : index
    %c32 = arith.constant 32 : index
    %76 = vector.load %arg15[%c0_37, %c32] : memref<8x128xf32, #tpu.memory_space<vmem>>, vector<8x32xf32>
    tpu.vector_store %arg15[%c0_37, %c32], %74 {strides = array<i32>} : memref<8x128xf32, #tpu.memory_space<vmem>>, vector<8x32xf32>,
    %c0_38 = arith.constant 0 : index
    %c64 = arith.constant 64 : index
    %77 = vector.load %arg15[%c0_38, %c64] : memref<8x128xf32, #tpu.memory_space<vmem>>, vector<8x32xf32>
    tpu.vector_store %arg15[%c0_38, %c64], %52 {strides = array<i32>} : memref<8x128xf32, #tpu.memory_space<vmem>>, vector<8x32xf32>,
    %c0_39 = arith.constant 0 : index
    %c96 = arith.constant 96 : index
    %78 = vector.load %arg15[%c0_39, %c96] : memref<8x128xf32, #tpu.memory_space<vmem>>, vector<8x32xf32>
    tpu.vector_store %arg15[%c0_39, %c96], %72 {strides = array<i32>} : memref<8x128xf32, #tpu.memory_space<vmem>>, vector<8x32xf32>,
    return
  }
  func.func @transform_0(%arg0: i32) -> (i32, i32) {
    %c0_i32 = arith.constant 0 : i32
    %c0_i32_0 = arith.constant 0 : i32
    return %arg0, %c0_i32 : i32, i32
  }
  func.func @transform_1(%arg0: i32) -> (i32, i32) {
    %c0_i32 = arith.constant 0 : i32
    %c0_i32_0 = arith.constant 0 : i32
    return %arg0, %c0_i32 : i32, i32
  }
  func.func @transform_2(%arg0: i32) -> (i32, i32) {
    %c0_i32 = arith.constant 0 : i32
    %c0_i32_0 = arith.constant 0 : i32
    return %arg0, %c0_i32 : i32, i32
  }
  func.func @transform_3(%arg0: i32) -> (i32, i32) {
    %c0_i32 = arith.constant 0 : i32
    %c0_i32_0 = arith.constant 0 : i32
    return %arg0, %c0_i32 : i32, i32
  }
  func.func @transform_4(%arg0: i32) -> (i32, i32) {
    %c0_i32 = arith.constant 0 : i32
    %c0_i32_0 = arith.constant 0 : i32
    return %arg0, %c0_i32 : i32, i32
  }
  func.func @transform_5(%arg0: i32) -> (i32, i32) {
    %c0_i32 = arith.constant 0 : i32
    %c0_i32_0 = arith.constant 0 : i32
    %c0_i32_1 = arith.constant 0 : i32
    return %c0_i32, %c0_i32_0 : i32, i32
  }
  func.func @transform_6(%arg0: i32) -> (i32, i32) {
    %c0_i32 = arith.constant 0 : i32
    %c0_i32_0 = arith.constant 0 : i32
    %c0_i32_1 = arith.constant 0 : i32
    return %c0_i32, %c0_i32_0 : i32, i32
  }
  func.func @transform_7(%arg0: i32) -> (i32, i32) {
    %c0_i32 = arith.constant 0 : i32
    %c0_i32_0 = arith.constant 0 : i32
    %c0_i32_1 = arith.constant 0 : i32
    return %c0_i32, %c0_i32_0 : i32, i32
  }
  func.func @transform_8(%arg0: i32) -> (i32, i32) {
    %c0_i32 = arith.constant 0 : i32
    %c0_i32_0 = arith.constant 0 : i32
    %c0_i32_1 = arith.constant 0 : i32
    return %c0_i32, %c0_i32_0 : i32, i32
  }
  func.func @transform_9(%arg0: i32) -> (i32, i32) {
    %c0_i32 = arith.constant 0 : i32
    %c0_i32_0 = arith.constant 0 : i32
    %c0_i32_1 = arith.constant 0 : i32
    return %c0_i32, %c0_i32_0 : i32, i32
  }
  func.func @transform_10(%arg0: i32) -> (i32, i32) {
    %c0_i32 = arith.constant 0 : i32
    %c0_i32_0 = arith.constant 0 : i32
    %c0_i32_1 = arith.constant 0 : i32
    return %c0_i32, %c0_i32_0 : i32, i32
  }
  func.func @transform_11(%arg0: i32) -> (i32, i32) {
    %c0_i32 = arith.constant 0 : i32
    %c0_i32_0 = arith.constant 0 : i32
    %c0_i32_1 = arith.constant 0 : i32
    return %c0_i32, %c0_i32_0 : i32, i32
  }
  func.func @transform_12(%arg0: i32) -> (i32, i32) {
    %c0_i32 = arith.constant 0 : i32
    %c0_i32_0 = arith.constant 0 : i32
    %c0_i32_1 = arith.constant 0 : i32
    return %c0_i32, %c0_i32_0 : i32, i32
  }
  func.func @transform_13(%arg0: i32) -> (i32, i32) {
    %c0_i32 = arith.constant 0 : i32
    %c0_i32_0 = arith.constant 0 : i32
    %c0_i32_1 = arith.constant 0 : i32
    return %c0_i32, %c0_i32_0 : i32, i32
  }
  func.func @transform_14(%arg0: i32) -> (i32, i32) {
    %c0_i32 = arith.constant 0 : i32
    %c0_i32_0 = arith.constant 0 : i32
    return %arg0, %c0_i32 : i32, i32
  }
}

</mosaic_0001>

<bundles_post_ra>
// kernel: tpu_custom_call.1
= control target key start
LH: loop header
LB: loop body
LE: loop exit
PB: predicated region body
PF: predicated region fallthrough
CT: control target
= control target key end

     0   :  { %19 = vsyncpa [#allocation3], 0  ;;  %s1229_s0 = inlined_call_operand.hbm [shape: f32[8,128], index: 0, kind: input, shape index: {}]   ;;  %s1230_s1 = inlined_call_operand.hbm [shape: f32[8,32], index: 1, kind: input, shape index: {}]   ;;  %s1231_s2 = inlined_call_operand.hbm [shape: f32[8,32], index: 2, kind: input, shape index: {}]   ;;  %s1232_s3 = inlined_call_operand.hbm [shape: f32[8,32], index: 3, kind: input, shape index: {}]   ;;  %s1233_s4 = inlined_call_operand.hbm [shape: f32[8,32], index: 4, kind: input, shape index: {}]   ;;  %s1234_s5 = inlined_call_operand.hbm [shape: bf16[32,128], index: 5, kind: input, shape index: {}]   ;;  %s1235_s6 = inlined_call_operand.hbm [shape: bf16[32,128], index: 6, kind: input, shape index: {}]   ;;  %s1236_s7 = inlined_call_operand.hbm [shape: bf16[32,128], index: 7, kind: input, shape index: {}]   ;;  %s1237_s8 = inlined_call_operand.hbm [shape: bf16[32,128], index: 8, kind: input, shape index: {}]   ;;  %s1238_s9 = inlined_call_operand.vmem [shape: bf16[1,128], index: 9, kind: input, shape index: {}]   ;;  %s1239_s10 = inlined_call_operand.hbm [shape: bf16[32,128], index: 10, kind: input, shape index: {}]   ;;  %s1240_s11 = inlined_call_operand.hbm [shape: bf16[32,128], index: 11, kind: input, shape index: {}]   ;;  %s1241_s12 = inlined_call_operand.hbm [shape: bf16[32,128], index: 12, kind: input, shape index: {}]   ;;  %s1242_s13 = inlined_call_operand.vmem [shape: bf16[1,128], index: 13, kind: input, shape index: {}]   ;;  %s1243_s14 = inlined_call_operand.hbm [shape: f32[8,128], index: 14, kind: output, shape index: {}]  }
   0x1   :  { %20 = vsyncpa [#allocation6], 0 }
   0x2   :  { %21 = vsyncpa [#allocation9], 0 }
   0x3   :  { %22 = vsyncpa [#allocation12], 0 }
   0x4   :  { %23 = vsyncpa [#allocation15], 0 }
   0x5   :  { %24 = vsyncpa [#allocation18], 0 }
   0x6   :  { %25 = vsyncpa [#allocation21], 0  ;;  %s43_s15 = sshll.u32 %s1230_s1, 4  ;;  %s44_s15 = int_to_ptr.hbm [resolvable:$true] %s43_s15 }
   0x7   :  { %26 = vsyncpa [#allocation4], 0  ;;  %s1043_s16 = smov [#allocation5]   ;;  %s65_s20 = sshll.u32 %s1232_s3, 4  ;;  %s66_s20 = int_to_ptr.hbm [resolvable:$true] %s65_s20 }
   0x8   :  { %s45_s17 = sshll.u32 %s1043_s16, 4  ;;  %s1044_s21 = smov [#allocation8]   ;;  %s46_s17 = int_to_ptr.vmem [resolvable:$true] %s45_s17 }
   0x9   :  { %48 = dma.hbm_to_vmem [thread:$0]  %s44_s15, 128, %s46_s17, [#allocation6]  }
   0xa   :  { %s67_s22 = sshll.u32 %s1044_s21, 4  ;;  %s86_s25 = sshll.u32 %s1234_s5, 4  ;;  %s68_s22 = int_to_ptr.vmem [resolvable:$true] %s67_s22  ;;  %s87_s25 = int_to_ptr.hbm [resolvable:$true] %s86_s25 }
   0xb   :  { %70 = dma.hbm_to_vmem [thread:$0]  %s66_s20, 128, %s68_s22, [#allocation9]  }
   0xc   :  { %s1045_s1 = smov [#allocation11]   ;;  %s112_s29 = sshll.u32 %s1236_s7, 4  ;;  %s113_s29 = int_to_ptr.hbm [resolvable:$true] %s112_s29 }
   0xd   :  { %s88_s26 = sshll.u32 %s1045_s1, 4  ;;  %s1046_s30 = smov 64   ;;  %s89_s26 = int_to_ptr.vmem [resolvable:$true] %s88_s26 }
   0xe   :  { %s1047_s3 = smov 4   ;;  %s1048_s15 = smov [#allocation14]  }
   0xf   :  { %94 = dma.hbm_to_vmem [thread:$0]  %s87_s25, 256, %s89_s26, [#allocation12], %s1046_s30, %s1046_s30, %s1047_s3  }
  0x10   :  { %s114_s16 = sshll.u32 %s1048_s15, 4  ;;  %s140_s18 = sshll.u32 %s1239_s10, 4  ;;  %s115_s16 = int_to_ptr.vmem [resolvable:$true] %s114_s16  ;;  %s141_s18 = int_to_ptr.hbm [resolvable:$true] %s140_s18 }
  0x11   :  { %120 = dma.hbm_to_vmem [thread:$0]  %s113_s29, 256, %s115_s16, [#allocation15], %s1046_s30, %s1046_s30, %s1047_s3  }
  0x12   :  { %s32_s20 = sshll.u32 %s1229_s0, 4  ;;  %s1049_s21 = smov [#allocation17]   ;;  %s33_s20 = int_to_ptr.hbm [resolvable:$true] %s32_s20 }
  0x13   :  { %s142_s22 = sshll.u32 %s1049_s21, 4  ;;  %s1050_s23 = smov [#allocation2]   ;;  %s143_s22 = int_to_ptr.vmem [resolvable:$true] %s142_s22 }
  0x14   :  { %148 = dma.hbm_to_vmem [thread:$0]  %s141_s18, 256, %s143_s22, [#allocation18], %s1046_s30, %s1046_s30, %s1047_s3  }
  0x15   :  { %s34_s10 = sshll.u32 %s1050_s23, 4  ;;  %s54_s1 = sshll.u32 %s1231_s2, 4  ;;  %s35_s10 = int_to_ptr.vmem [resolvable:$true] %s34_s10  ;;  %s55_s1 = int_to_ptr.hbm [resolvable:$true] %s54_s1 }
  0x16   :  { %37 = dma.hbm_to_vmem [thread:$0]  %s33_s20, 128, %s35_s10, [#allocation3]  }
  0x17   :  { %s76_s0 = sshll.u32 %s1233_s4, 4  ;;  %s1051_s28 = smov [#allocation7]   ;;  %s77_s0 = int_to_ptr.hbm [resolvable:$true] %s76_s0 }
  0x18   :  { %s56_s29 = sshll.u32 %s1051_s28, 4  ;;  %s1052_s15 = smov [#allocation10]   ;;  %s57_s29 = int_to_ptr.vmem [resolvable:$true] %s56_s29 }
  0x19   :  { %59 = dma.hbm_to_vmem [thread:$0]  %s55_s1, 128, %s57_s29, [#allocation6]  }
  0x1a   :  { %s78_s16 = sshll.u32 %s1052_s15, 4  ;;  %s99_s18 = sshll.u32 %s1235_s6, 4  ;;  %s79_s16 = int_to_ptr.vmem [resolvable:$true] %s78_s16  ;;  %s100_s18 = int_to_ptr.hbm [resolvable:$true] %s99_s18 }
  0x1b   :  { %81 = dma.hbm_to_vmem [thread:$0]  %s77_s0, 128, %s79_s16, [#allocation9]  }
  0x1c   :  { %s125_s19 = sshll.u32 %s1237_s8, 4  ;;  %s1053_s20 = smov [#allocation13]   ;;  %s126_s19 = int_to_ptr.hbm [resolvable:$true] %s125_s19 }
  0x1d   :  { %s101_s4 = sshll.u32 %s1053_s20, 4  ;;  %s1054_s21 = smov [#allocation16]   ;;  %s102_s4 = int_to_ptr.vmem [resolvable:$true] %s101_s4 }
  0x1e   :  { %107 = dma.hbm_to_vmem [thread:$0]  %s100_s18, 256, %s102_s4, [#allocation12], %s1046_s30, %s1046_s30, %s1047_s3  }
  0x1f   :  { %s127_s22 = sshll.u32 %s1054_s21, 4  ;;  %s153_s6 = sshll.u32 %s1240_s11, 4  ;;  %s128_s22 = int_to_ptr.vmem [resolvable:$true] %s127_s22  ;;  %s154_s6 = int_to_ptr.hbm [resolvable:$true] %s153_s6 }
  0x20   :  { %133 = dma.hbm_to_vmem [thread:$0]  %s126_s19, 256, %s128_s22, [#allocation15], %s1046_s30, %s1046_s30, %s1047_s3  }
  0x21   :  { %s166_s25 = sshll.u32 %s1241_s12, 4  ;;  %s1055_s1 = smov [#allocation19]   ;;  %s167_s25 = int_to_ptr.hbm [resolvable:$true] %s166_s25 }
  0x22   :  { %s155_s26 = sshll.u32 %s1055_s1, 4  ;;  %s1056_s27 = smov [#allocation20]   ;;  %s156_s26 = int_to_ptr.vmem [resolvable:$true] %s155_s26 }
  0x23   :  { %161 = dma.hbm_to_vmem [thread:$0]  %s154_s6, 256, %s156_s26, [#allocation18], %s1046_s30, %s1046_s30, %s1047_s3  }
  0x24   :  { %s168_s11 = sshll.u32 %s1056_s27, 4  ;;  %s169_s11 = int_to_ptr.vmem [resolvable:$true] %s168_s11 }
  0x25   :  { %174 = dma.hbm_to_vmem [thread:$0]  %s167_s25, 256, %s169_s11, [#allocation21], %s1046_s30, %s1046_s30, %s1047_s3  }
  0x26   :  { %1027 = dma.done.wait [#allocation3], 128  }
  0x27   :  { %1028 = vsyncadd [#allocation3], 4294967168 }
  0x28   :  { %1029 = dma.done.wait [#allocation6], 256  }
  0x29   :  { %1030 = vsyncadd [#allocation6], 4294967040 }
  0x2a   :  { %1031 = dma.done.wait [#allocation9], 256  }
  0x2b   :  { %1032 = vsyncadd [#allocation9], 4294967040 }
  0x2c   :  { %1033 = dma.done.wait [#allocation12], 512  }
  0x2d   :  { %1034 = vsyncadd [#allocation12], 4294966784 }
  0x2e   :  { %1035 = dma.done.wait [#allocation15], 512  }
  0x2f   :  { %1036 = vsyncadd [#allocation15], 4294966784 }
  0x30   :  { %1037 = dma.done.wait [#allocation18], 512  }
  0x31   :  { %1038 = vsyncadd [#allocation18], 4294966784 }
  0x32   :  { %1039 = dma.done.wait [#allocation21], 256  }
  0x33   :  { %1040 = vsyncadd [#allocation21], 4294967040  ;;  %v1192_v0 = vld [vmem:[#allocation2] sm:$0xff]  ;;  %v673_v3 = vld [vmem:[#allocation14 + $0x8] sm:$0xff]  ;;  %s1057_s12 = smov 96   ;;  %vm248_vm0 = vcmask 261120  }
  0x34   :  { %v671_v1 = vld [vmem:[#allocation16 + $0x8] sm:$0xff]  ;;  %v227_v2 = vpack.c.bf16 %v1192_v0, %v1192_v0  ;;  %460 = vrot.lane.b32.xlu1 %v1192_v0, %s1057_s12  ;;  %v670_v5 = vld [vmem:[#allocation16] sm:$0xff]  ;;  %v672_v6 = vld [vmem:[#allocation14] sm:$0xff]  ;;  %323 = vmatpush.bf16.msra.mxu2 %v673_v3  ;;  %s1058_s28 = smov 32   ;;  %vm566_vm9 = vcmask 523520   ;;  %s587_s17 = sshll.u32 %s1243_s14, 4  ;;  %s588_s17 = int_to_ptr.hbm [resolvable:$true] %s587_s17 }
  0x35   :  { %v675_v4 = vld [vmem:[#allocation13 + $0x8] sm:$0xff]  ;;  %258 = vmatpush.bf16.msra.mxu0 %v671_v1  ;;  %v296_v7 = vld [vmem:[#allocation7] sm:$0xff]  ;;  %v674_v10 = vld [vmem:[#allocation13] sm:$0xff]  ;;  %vm572_vm10 = vcmask 785920   ;;  %vm578_vm11 = vcmask 1048320  }
  0x36   :  { %266 = vrot.lane.b32.xlu0 %v227_v2, %s1057_s12  ;;  %v669_v8 = vld [vmem:[#allocation11 + $0x8] sm:$0xff]  ;;  %358 = vmatpush.bf16.msra.mxu3 %v675_v4  ;;  %v331_v11 = vld [vmem:[#allocation5] sm:$0xff]  ;;  %v297_v13 = vpack.c.bf16 %v296_v7, %v296_v7  ;;  %v370_v19 = vld [vmem:[#allocation8] sm:$0xff] }
  0x37   :  { %v679_v9 = vld [vmem:[#allocation20 + $0x8] sm:$0xff]  ;;  %289 = vmatpush.bf16.msra.mxu1 %v669_v8  ;;  %v668_v12 = vld [vmem:[#allocation11] sm:$0xff]  ;;  %v332_v14 = vpack.c.bf16 %v331_v11, %v331_v11  ;;  %v371_v20 = vld [vmem:[#allocation10] sm:$0xff] }
  0x38   :  { %324 = vmatpush.bf16.msra.mxu2 %v672_v6  ;;  %v678_v15 = vld [vmem:[#allocation20] sm:$0xff]  ;;  %v677_v16 = vld [vmem:[#allocation17 + $0x8] sm:$0xff]  ;;  %v372_v21 = vadd.f32 %v371_v20, %v370_v19  ;;  %v366_v29 = vld [vmem:[%s1238_s9] sm:$0x1] }
  0x39   :  { %259 = vmatpush.bf16.msra.mxu0 %v670_v5  ;;  %v676_v17 = vld [vmem:[#allocation17] sm:$0xff]  ;;  %v367_v30 = vunpack.c.l.bf16 %v366_v29  ;;  %v681_v1 = vld [vmem:[#allocation19 + $0x8] sm:$0xff] }
  0x3a   :  { %359 = vmatpush.bf16.msra.mxu3 %v674_v10  ;;  %v373_v22 = vpack.c.bf16 %v372_v21, %v372_v21  ;;  %v435_v8 = vld [vmem:[%s1242_s13] sm:$0x1]  ;;  %s1059_s13 = smov [#allocation22]  }
  0x3b   :  { %290 = vmatpush.bf16.msra.mxu1 %v668_v12  ;;  %629 = vmatmul.msk.bf16.vlgmr.msra.gmra.mxu2 %vm248_vm0, %v297_v13  ;;  %v368_v35 = vperm.slane %v367_v30, 0  ;;  %s585_s15 = sshll.u32 %s1059_s13, 4  ;;  %s586_s15 = int_to_ptr.vmem [resolvable:$true] %s585_s15 }
  0x3c   :  { %611 = vmatmul.msk.bf16.vlgmr.msra.gmra.mxu0 %vm248_vm0, %v227_v2  ;;  %509 = vmatpush.bf16.msrb.mxu2 %v681_v1  ;;  %v680_v2 = vld [vmem:[#allocation19] sm:$0xff] }
  0x3d   :  { %400 = vmatpush.bf16.msrb.mxu0 %v679_v9  ;;  %638 = vmatmul.msk.bf16.vlgmr.msra.gmra.mxu3 %vm248_vm0, %v332_v14  ;;  %v436_v9 = vunpack.c.l.bf16 %v435_v8 }
  0x3f   :  { %428 = vmatpush.bf16.msrb.mxu1 %v677_v16  ;;  %v437_v10 = vperm.slane %v436_v9, 0 }
  0x40   :  { %510 = vmatpush.bf16.msrb.mxu2 %v680_v2 }
  0x41   :  { %401 = vmatpush.bf16.msrb.mxu0 %v678_v15 }
  0x43   :  { %429 = vmatpush.bf16.msrb.mxu1 %v676_v17 }
  0xa6   :  { %v461_v59 = vpop.permute.xlu1 %460 }
  0xa8   :  { %v267_v18 = vpop.permute.xlu0 %266 }
  0xa9   :  { %620 = vmatmul.msk.bf16.vlgmr.msra.gmra.mxu1 %vm248_vm0, %v267_v18  ;;  %647 = vmatmul.msk.bf16.vlgmr.msrb.gmra.mxu0 %vm248_vm0, %v267_v18 }
  0xb9   :  { %656 = vmatmul.msk.bf16.vlgmr.msrb.gmra.mxu1 %vm248_vm0, %v373_v22  ;;  %v261_v23 = vpop.f32.mrf.mxu0 }
  0xbe   :  { %v326_v24 = vpop.f32.mrf.mxu2 }
  0xc0   :  { %v361_v26 = vpop.f32.mrf.mxu3 }
  0xc1   :  { %v263_v25 = vpop.f32.mrf.mxu0 }
  0xc6   :  { %v328_v27 = vpop.f32.mrf.mxu2 }
  0xc8   :  { %v363_v28 = vpop.f32.mrf.mxu3 }
 0x126   :  { %v292_v31 = vpop.f32.mrf.mxu1  ;;  %v403_v32 = vpop.f32.mrf.mxu0 }
 0x127   :  { %v293_v33 = vadd.f32 %v292_v31, %v261_v23 }
 0x129   :  { %v330_v34 = vadd.f32 %v326_v24, %v293_v33 }
 0x12b   :  { %v365_v36 = vadd.f32 %v361_v26, %v330_v34 }
 0x12d   :  { %v369_v37 = vadd.f32 %v368_v35, %v365_v36 }
 0x12e   :  { %v294_v38 = vpop.f32.mrf.mxu1  ;;  %v405_v39 = vpop.f32.mrf.mxu0 }
 0x12f   :  { %699 = vtanh.f32 %v369_v37  ;;  %v657_v44 = vmul.f32 -1.442695, %v369_v37 }
 0x131   :  { %701 = vpow2.f32 %v657_v44 }
 0x135   :  { %v700_v40 = vpop.eup %699 }
 0x136   :  { %v431_v41 = vpop.f32.mrf.mxu1  ;;  %465 = vrot.lane.b32.xlu0 %v700_v40, %s1058_s28 }
 0x137   :  { %v432_v42 = vadd.f32 %v431_v41, %v403_v32  ;;  %v702_v45 = vpop.eup %701 }
 0x138   :  { %v442_v46 = vadd.f32 1.0, %v702_v45 }
 0x139   :  { %v438_v11 = vadd.f32 %v437_v10, %v432_v42 }
 0x13a   :  { %703 = vrcp.f32 %v442_v46  ;;  %v454_v52 = vand.u32 2147483648, %v442_v46  ;;  %vm448_vm2 = vweird.f32 %v442_v46  ;;  %v452_v53 = vand.u32 2147483647, %v442_v46 }
 0x13c   :  { %v455_v55 = vor.u32 1.1754944e-38, %v454_v52  ;;  %vm453_vm4 = vcmp.eq.f32.partialorder %v452_v53, 8.507059e+37 }
 0x13e   :  { %v433_v43 = vpop.f32.mrf.mxu1 }
 0x140   :  { %v704_v47 = vpop.eup %703 }
 0x141   :  { %v444_v48 = vmul.f32 %v704_v47, %v442_v46  ;;  %vm449_vm1 = vweird.f32 %v704_v47 }
 0x142   :  { %vm450_vm3 = vmor %vm448_vm2, %vm449_vm1 }
 0x143   :  { %v445_v49 = vsub.f32 1.0, %v444_v48 }
 0x145   :  { %v446_v50 = vmul.f32 %v704_v47, %v445_v49 }
 0x147   :  { %v447_v51 = vadd.f32 %v704_v47, %v446_v50 }
 0x149   :  { %v451_v54 = vsel %vm450_vm3, %v704_v47, %v447_v51 }
 0x14a   :  { %v456_v56 = vsel %vm453_vm4, %v455_v55, %v451_v54 }
 0x14b   :  { %v463_v60 = vmul.f32 %v461_v59, %v456_v56 }
 0x1a8   :  { %v466_v57 = vpop.permute.xlu0 %465 }
 0x1a9   :  { %v468_v58 = vmul.f32 %v466_v57, %v456_v56 }
 0x1ab   :  { %470 = vrot.lane.b32.xlu1 %v468_v58, %s1058_s28 }
 0x1b3   :  { %537 = vrot.lane.b32.xlu1 %v1192_v0, %s1046_s30 }
 0x21d   :  { %v471_v61 = vpop.permute.xlu1 %470 }
 0x21e   :  { %v473_v62 = vadd.f32 %v471_v61, %v463_v60 }
 0x220   :  { %705 = vtanh.f32 %v473_v62 }
 0x225   :  { %v538_v6 = vpop.permute.xlu1 %537 }
 0x226   :  { %v706_v63 = vpop.eup %705 }
 0x227   :  { %476 = vrot.lane.b32.xlu2 %v706_v63, %s1058_s28 }
 0x281   :  { %v477_v3 = vpop.permute.xlu2 %476 }
 0x282   :  { %v479_v4 = vmul.f32 %v477_v3, %v456_v56 }
 0x284   :  { %558 = vrot.lane.b32.xlu1 %v479_v4, %s1046_s30  ;;  %v480_v5 = vpack.c.bf16 %v479_v4, %v479_v4 }
 0x286   :  { %486 = vrot.lane.b32.xlu2 %v480_v5, %s1046_s30 }
 0x2e0   :  { %v487_v0 = vpop.permute.xlu2 %486 }
 0x2e1   :  { %666 = vmatmul.msk.bf16.vlgmr.msrb.gmra.mxu2 %vm248_vm0, %v487_v0 }
 0x2f6   :  { %v559_v7 = vpop.permute.xlu1 %558 }
 0x2f7   :  { %561 = vst.msk [vmem:[#allocation22] sm:$0xff] %vm248_vm0, %v559_v7 }
 0x364   :  { %v512_v12 = vpop.f32.mrf.mxu2 }
 0x365   :  { %v516_v13 = vadd.f32 %v512_v12, %v438_v11 }
 0x367   :  { %707 = vtanh.f32 %v516_v13  ;;  %v667_v16 = vmul.f32 -1.442695, %v516_v13 }
 0x369   :  { %709 = vpow2.f32 %v667_v16 }
 0x36c   :  { %v514_v14 = vpop.f32.mrf.mxu2 }
 0x36d   :  { %v708_v15 = vpop.eup %707 }
 0x36e   :  { %542 = vrot.lane.b32.xlu0 %v708_v15, %s1058_s28 }
 0x36f   :  { %v710_v17 = vpop.eup %709 }
 0x370   :  { %v520_v18 = vadd.f32 1.0, %v710_v17 }
 0x372   :  { %711 = vrcp.f32 %v520_v18  ;;  %v532_v24 = vand.u32 2147483648, %v520_v18  ;;  %vm526_vm6 = vweird.f32 %v520_v18  ;;  %v530_v25 = vand.u32 2147483647, %v520_v18 }
 0x374   :  { %v533_v27 = vor.u32 1.1754944e-38, %v532_v24  ;;  %vm531_vm8 = vcmp.eq.f32.partialorder %v530_v25, 8.507059e+37 }
 0x378   :  { %v712_v19 = vpop.eup %711 }
 0x379   :  { %v522_v20 = vmul.f32 %v712_v19, %v520_v18  ;;  %vm527_vm5 = vweird.f32 %v712_v19 }
 0x37a   :  { %vm528_vm7 = vmor %vm526_vm6, %vm527_vm5 }
 0x37b   :  { %v523_v21 = vsub.f32 1.0, %v522_v20 }
 0x37d   :  { %v524_v22 = vmul.f32 %v712_v19, %v523_v21 }
 0x37f   :  { %v525_v23 = vadd.f32 %v712_v19, %v524_v22 }
 0x381   :  { %v529_v26 = vsel %vm528_vm7, %v712_v19, %v525_v23 }
 0x382   :  { %v534_v29 = vsel %vm531_vm8, %v533_v27, %v529_v26 }
 0x383   :  { %v540_v31 = vmul.f32 %v538_v6, %v534_v29 }
 0x3e0   :  { %v543_v28 = vpop.permute.xlu0 %542 }
 0x3e1   :  { %v545_v30 = vmul.f32 %v543_v28, %v534_v29 }
 0x3e3   :  { %547 = vrot.lane.b32.xlu2 %v545_v30, %s1058_s28 }
 0x43d   :  { %v548_v32 = vpop.permute.xlu2 %547 }
 0x43e   :  { %v550_v33 = vadd.f32 %v548_v32, %v540_v31 }
 0x440   :  { %713 = vtanh.f32 %v550_v33  ;;  %575 = vrot.lane.b32.xlu1 %v550_v33, %s1046_s30 }
 0x446   :  { %v714_v34 = vpop.eup %713 }
 0x447   :  { %553 = vrot.lane.b32.xlu0 %v714_v34, %s1058_s28 }
 0x44f   :  { %569 = vrot.lane.b32.xlu0 %v473_v62, %s1058_s28 }
 0x4b2   :  { %v576_v39 = vpop.permute.xlu1 %575 }
 0x4b9   :  { %v554_v35 = vpop.permute.xlu0 %553 }
 0x4ba   :  { %v556_v36 = vmul.f32 %v554_v35, %v534_v29 }
 0x4bc   :  { %563 = vrot.lane.b32.xlu2 %v556_v36, %s1057_s12 }
 0x4c1   :  { %v570_v38 = vpop.permute.xlu0 %569 }
 0x516   :  { %v564_v37 = vpop.permute.xlu2 %563 }
 0x517   :  { %567 = vst.msk [vmem:[#allocation22] sm:$0xff] %vm566_vm9, %v564_v37 }
 0x518   :  { %573 = vst.msk [vmem:[#allocation22] sm:$0xff] %vm572_vm10, %v570_v38 }
 0x519   :  { %579 = vst.msk [vmem:[#allocation22] sm:$0xff] %vm578_vm11, %v576_v39 }
 0x51a   :  { %590 = dma.vmem_to_hbm [thread:$0]  %s586_s15, 128, %s588_s17, [#allocation4]  }
 0x51b   :  { %1041 = dma.done.wait [#allocation4], 128  }
 0x51c   :  { %1042 = vsyncadd [#allocation4], 4294967168 }
 0x51d   :  { %595 = vsyncpa [#allocation3], 1 }
 0x51e   :  { %596 = vsyncpa [#allocation6], 1 }
 0x51f   :  { %597 = vsyncpa [#allocation9], 1 }
 0x520   :  { %598 = vsyncpa [#allocation12], 1 }
 0x521   :  { %599 = vsyncpa [#allocation15], 1 }
 0x522   :  { %600 = vsyncpa [#allocation18], 1 }
 0x523   :  { %601 = vsyncpa [#allocation21], 1 }
 0x524   :  { %602 = vsyncpa [#allocation4], 1 }

// kernel: tpu_custom_call.1
= control target key start
LH: loop header
LB: loop body
LE: loop exit
PB: predicated region body
PF: predicated region fallthrough
CT: control target
= control target key end

     0   :  { %19 = vsyncpa [#allocation3], 0  ;;  %s1229_s0 = inlined_call_operand.hbm [shape: f32[8,128], index: 0, kind: input, shape index: {}]   ;;  %s1230_s1 = inlined_call_operand.hbm [shape: f32[8,32], index: 1, kind: input, shape index: {}]   ;;  %s1231_s2 = inlined_call_operand.hbm [shape: f32[8,32], index: 2, kind: input, shape index: {}]   ;;  %s1232_s3 = inlined_call_operand.hbm [shape: f32[8,32], index: 3, kind: input, shape index: {}]   ;;  %s1233_s4 = inlined_call_operand.hbm [shape: f32[8,32], index: 4, kind: input, shape index: {}]   ;;  %s1234_s5 = inlined_call_operand.hbm [shape: bf16[32,128], index: 5, kind: input, shape index: {}]   ;;  %s1235_s6 = inlined_call_operand.hbm [shape: bf16[32,128], index: 6, kind: input, shape index: {}]   ;;  %s1236_s7 = inlined_call_operand.hbm [shape: bf16[32,128], index: 7, kind: input, shape index: {}]   ;;  %s1237_s8 = inlined_call_operand.hbm [shape: bf16[32,128], index: 8, kind: input, shape index: {}]   ;;  %s1238_s9 = inlined_call_operand.vmem [shape: bf16[1,128], index: 9, kind: input, shape index: {}]   ;;  %s1239_s10 = inlined_call_operand.hbm [shape: bf16[32,128], index: 10, kind: input, shape index: {}]   ;;  %s1240_s11 = inlined_call_operand.hbm [shape: bf16[32,128], index: 11, kind: input, shape index: {}]   ;;  %s1241_s12 = inlined_call_operand.hbm [shape: bf16[32,128], index: 12, kind: input, shape index: {}]   ;;  %s1242_s13 = inlined_call_operand.vmem [shape: bf16[1,128], index: 13, kind: input, shape index: {}]   ;;  %s1243_s14 = inlined_call_operand.hbm [shape: f32[8,128], index: 14, kind: output, shape index: {}]  }
   0x1   :  { %20 = vsyncpa [#allocation6], 0 }
   0x2   :  { %21 = vsyncpa [#allocation9], 0 }
   0x3   :  { %22 = vsyncpa [#allocation12], 0 }
   0x4   :  { %23 = vsyncpa [#allocation15], 0 }
   0x5   :  { %24 = vsyncpa [#allocation18], 0 }
   0x6   :  { %25 = vsyncpa [#allocation21], 0  ;;  %s43_s15 = sshll.u32 %s1230_s1, 4  ;;  %s44_s15 = int_to_ptr.hbm [resolvable:$true] %s43_s15 }
   0x7   :  { %26 = vsyncpa [#allocation4], 0  ;;  %s1043_s16 = smov [#allocation5]   ;;  %s65_s20 = sshll.u32 %s1232_s3, 4  ;;  %s66_s20 = int_to_ptr.hbm [resolvable:$true] %s65_s20 }
   0x8   :  { %s45_s17 = sshll.u32 %s1043_s16, 4  ;;  %s1044_s21 = smov [#allocation8]   ;;  %s46_s17 = int_to_ptr.vmem [resolvable:$true] %s45_s17 }
   0x9   :  { %48 = dma.hbm_to_vmem [thread:$0]  %s44_s15, 128, %s46_s17, [#allocation6]  }
   0xa   :  { %s67_s22 = sshll.u32 %s1044_s21, 4  ;;  %s86_s25 = sshll.u32 %s1234_s5, 4  ;;  %s68_s22 = int_to_ptr.vmem [resolvable:$true] %s67_s22  ;;  %s87_s25 = int_to_ptr.hbm [resolvable:$true] %s86_s25 }
   0xb   :  { %70 = dma.hbm_to_vmem [thread:$0]  %s66_s20, 128, %s68_s22, [#allocation9]  }
   0xc   :  { %s1045_s1 = smov [#allocation11]   ;;  %s112_s29 = sshll.u32 %s1236_s7, 4  ;;  %s113_s29 = int_to_ptr.hbm [resolvable:$true] %s112_s29 }
   0xd   :  { %s88_s26 = sshll.u32 %s1045_s1, 4  ;;  %s1046_s30 = smov 64   ;;  %s89_s26 = int_to_ptr.vmem [resolvable:$true] %s88_s26 }
   0xe   :  { %s1047_s3 = smov 4   ;;  %s1048_s15 = smov [#allocation14]  }
   0xf   :  { %94 = dma.hbm_to_vmem [thread:$0]  %s87_s25, 256, %s89_s26, [#allocation12], %s1046_s30, %s1046_s30, %s1047_s3  }
  0x10   :  { %s114_s16 = sshll.u32 %s1048_s15, 4  ;;  %s140_s18 = sshll.u32 %s1239_s10, 4  ;;  %s115_s16 = int_to_ptr.vmem [resolvable:$true] %s114_s16  ;;  %s141_s18 = int_to_ptr.hbm [resolvable:$true] %s140_s18 }
  0x11   :  { %120 = dma.hbm_to_vmem [thread:$0]  %s113_s29, 256, %s115_s16, [#allocation15], %s1046_s30, %s1046_s30, %s1047_s3  }
  0x12   :  { %s32_s20 = sshll.u32 %s1229_s0, 4  ;;  %s1049_s21 = smov [#allocation17]   ;;  %s33_s20 = int_to_ptr.hbm [resolvable:$true] %s32_s20 }
  0x13   :  { %s142_s22 = sshll.u32 %s1049_s21, 4  ;;  %s1050_s23 = smov [#allocation2]   ;;  %s143_s22 = int_to_ptr.vmem [resolvable:$true] %s142_s22 }
  0x14   :  { %148 = dma.hbm_to_vmem [thread:$0]  %s141_s18, 256, %s143_s22, [#allocation18], %s1046_s30, %s1046_s30, %s1047_s3  }
  0x15   :  { %s34_s10 = sshll.u32 %s1050_s23, 4  ;;  %s54_s1 = sshll.u32 %s1231_s2, 4  ;;  %s35_s10 = int_to_ptr.vmem [resolvable:$true] %s34_s10  ;;  %s55_s1 = int_to_ptr.hbm [resolvable:$true] %s54_s1 }
  0x16   :  { %37 = dma.hbm_to_vmem [thread:$0]  %s33_s20, 128, %s35_s10, [#allocation3]  }
  0x17   :  { %s76_s0 = sshll.u32 %s1233_s4, 4  ;;  %s1051_s28 = smov [#allocation7]   ;;  %s77_s0 = int_to_ptr.hbm [resolvable:$true] %s76_s0 }
  0x18   :  { %s56_s29 = sshll.u32 %s1051_s28, 4  ;;  %s1052_s15 = smov [#allocation10]   ;;  %s57_s29 = int_to_ptr.vmem [resolvable:$true] %s56_s29 }
  0x19   :  { %59 = dma.hbm_to_vmem [thread:$0]  %s55_s1, 128, %s57_s29, [#allocation6]  }
  0x1a   :  { %s78_s16 = sshll.u32 %s1052_s15, 4  ;;  %s99_s18 = sshll.u32 %s1235_s6, 4  ;;  %s79_s16 = int_to_ptr.vmem [resolvable:$true] %s78_s16  ;;  %s100_s18 = int_to_ptr.hbm [resolvable:$true] %s99_s18 }
  0x1b   :  { %81 = dma.hbm_to_vmem [thread:$0]  %s77_s0, 128, %s79_s16, [#allocation9]  }
  0x1c   :  { %s125_s19 = sshll.u32 %s1237_s8, 4  ;;  %s1053_s20 = smov [#allocation13]   ;;  %s126_s19 = int_to_ptr.hbm [resolvable:$true] %s125_s19 }
  0x1d   :  { %s101_s4 = sshll.u32 %s1053_s20, 4  ;;  %s1054_s21 = smov [#allocation16]   ;;  %s102_s4 = int_to_ptr.vmem [resolvable:$true] %s101_s4 }
  0x1e   :  { %107 = dma.hbm_to_vmem [thread:$0]  %s100_s18, 256, %s102_s4, [#allocation12], %s1046_s30, %s1046_s30, %s1047_s3  }
  0x1f   :  { %s127_s22 = sshll.u32 %s1054_s21, 4  ;;  %s153_s6 = sshll.u32 %s1240_s11, 4  ;;  %s128_s22 = int_to_ptr.vmem [resolvable:$true] %s127_s22  ;;  %s154_s6 = int_to_ptr.hbm [resolvable:$true] %s153_s6 }
  0x20   :  { %133 = dma.hbm_to_vmem [thread:$0]  %s126_s19, 256, %s128_s22, [#allocation15], %s1046_s30, %s1046_s30, %s1047_s3  }
  0x21   :  { %s166_s25 = sshll.u32 %s1241_s12, 4  ;;  %s1055_s1 = smov [#allocation19]   ;;  %s167_s25 = int_to_ptr.hbm [resolvable:$true] %s166_s25 }
  0x22   :  { %s155_s26 = sshll.u32 %s1055_s1, 4  ;;  %s1056_s27 = smov [#allocation20]   ;;  %s156_s26 = int_to_ptr.vmem [resolvable:$true] %s155_s26 }
  0x23   :  { %161 = dma.hbm_to_vmem [thread:$0]  %s154_s6, 256, %s156_s26, [#allocation18], %s1046_s30, %s1046_s30, %s1047_s3  }
  0x24   :  { %s168_s11 = sshll.u32 %s1056_s27, 4  ;;  %s169_s11 = int_to_ptr.vmem [resolvable:$true] %s168_s11 }
  0x25   :  { %174 = dma.hbm_to_vmem [thread:$0]  %s167_s25, 256, %s169_s11, [#allocation21], %s1046_s30, %s1046_s30, %s1047_s3  }
  0x26   :  { %1027 = dma.done.wait [#allocation3], 128  }
  0x27   :  { %1028 = vsyncadd [#allocation3], 4294967168 }
  0x28   :  { %1029 = dma.done.wait [#allocation6], 256  }
  0x29   :  { %1030 = vsyncadd [#allocation6], 4294967040 }
  0x2a   :  { %1031 = dma.done.wait [#allocation9], 256  }
  0x2b   :  { %1032 = vsyncadd [#allocation9], 4294967040 }
  0x2c   :  { %1033 = dma.done.wait [#allocation12], 512  }
  0x2d   :  { %1034 = vsyncadd [#allocation12], 4294966784 }
  0x2e   :  { %1035 = dma.done.wait [#allocation15], 512  }
  0x2f   :  { %1036 = vsyncadd [#allocation15], 4294966784 }
  0x30   :  { %1037 = dma.done.wait [#allocation18], 512  }
  0x31   :  { %1038 = vsyncadd [#allocation18], 4294966784 }
  0x32   :  { %1039 = dma.done.wait [#allocation21], 256  }
  0x33   :  { %1040 = vsyncadd [#allocation21], 4294967040  ;;  %v1192_v0 = vld [vmem:[#allocation2] sm:$0xff]  ;;  %v673_v3 = vld [vmem:[#allocation14 + $0x8] sm:$0xff]  ;;  %s1057_s12 = smov 96   ;;  %vm248_vm0 = vcmask 261120  }
  0x34   :  { %v671_v1 = vld [vmem:[#allocation16 + $0x8] sm:$0xff]  ;;  %v227_v2 = vpack.c.bf16 %v1192_v0, %v1192_v0  ;;  %460 = vrot.lane.b32.xlu1 %v1192_v0, %s1057_s12  ;;  %v670_v5 = vld [vmem:[#allocation16] sm:$0xff]  ;;  %v672_v6 = vld [vmem:[#allocation14] sm:$0xff]  ;;  %323 = vmatpush.bf16.msra.mxu2 %v673_v3  ;;  %s1058_s28 = smov 32   ;;  %vm566_vm9 = vcmask 523520   ;;  %s587_s17 = sshll.u32 %s1243_s14, 4  ;;  %s588_s17 = int_to_ptr.hbm [resolvable:$true] %s587_s17 }
  0x35   :  { %v675_v4 = vld [vmem:[#allocation13 + $0x8] sm:$0xff]  ;;  %258 = vmatpush.bf16.msra.mxu0 %v671_v1  ;;  %v296_v7 = vld [vmem:[#allocation7] sm:$0xff]  ;;  %v674_v10 = vld [vmem:[#allocation13] sm:$0xff]  ;;  %vm572_vm10 = vcmask 785920   ;;  %vm578_vm11 = vcmask 1048320  }
  0x36   :  { %266 = vrot.lane.b32.xlu0 %v227_v2, %s1057_s12  ;;  %v669_v8 = vld [vmem:[#allocation11 + $0x8] sm:$0xff]  ;;  %358 = vmatpush.bf16.msra.mxu3 %v675_v4  ;;  %v331_v11 = vld [vmem:[#allocation5] sm:$0xff]  ;;  %v297_v13 = vpack.c.bf16 %v296_v7, %v296_v7  ;;  %v370_v19 = vld [vmem:[#allocation8] sm:$0xff] }
  0x37   :  { %v679_v9 = vld [vmem:[#allocation20 + $0x8] sm:$0xff]  ;;  %289 = vmatpush.bf16.msra.mxu1 %v669_v8  ;;  %v668_v12 = vld [vmem:[#allocation11] sm:$0xff]  ;;  %v332_v14 = vpack.c.bf16 %v331_v11, %v331_v11  ;;  %v371_v20 = vld [vmem:[#allocation10] sm:$0xff] }
  0x38   :  { %324 = vmatpush.bf16.msra.mxu2 %v672_v6  ;;  %v678_v15 = vld [vmem:[#allocation20] sm:$0xff]  ;;  %v677_v16 = vld [vmem:[#allocation17 + $0x8] sm:$0xff]  ;;  %v372_v21 = vadd.f32 %v371_v20, %v370_v19  ;;  %v366_v29 = vld [vmem:[%s1238_s9] sm:$0x1] }
  0x39   :  { %259 = vmatpush.bf16.msra.mxu0 %v670_v5  ;;  %v676_v17 = vld [vmem:[#allocation17] sm:$0xff]  ;;  %v367_v30 = vunpack.c.l.bf16 %v366_v29  ;;  %v681_v1 = vld [vmem:[#allocation19 + $0x8] sm:$0xff] }
  0x3a   :  { %359 = vmatpush.bf16.msra.mxu3 %v674_v10  ;;  %v373_v22 = vpack.c.bf16 %v372_v21, %v372_v21  ;;  %v435_v8 = vld [vmem:[%s1242_s13] sm:$0x1]  ;;  %s1059_s13 = smov [#allocation22]  }
  0x3b   :  { %290 = vmatpush.bf16.msra.mxu1 %v668_v12  ;;  %629 = vmatmul.msk.bf16.vlgmr.msra.gmra.mxu2 %vm248_vm0, %v297_v13  ;;  %v368_v35 = vperm.slane %v367_v30, 0  ;;  %s585_s15 = sshll.u32 %s1059_s13, 4  ;;  %s586_s15 = int_to_ptr.vmem [resolvable:$true] %s585_s15 }
  0x3c   :  { %611 = vmatmul.msk.bf16.vlgmr.msra.gmra.mxu0 %vm248_vm0, %v227_v2  ;;  %509 = vmatpush.bf16.msrb.mxu2 %v681_v1  ;;  %v680_v2 = vld [vmem:[#allocation19] sm:$0xff] }
  0x3d   :  { %400 = vmatpush.bf16.msrb.mxu0 %v679_v9  ;;  %638 = vmatmul.msk.bf16.vlgmr.msra.gmra.mxu3 %vm248_vm0, %v332_v14  ;;  %v436_v9 = vunpack.c.l.bf16 %v435_v8 }
  0x3f   :  { %428 = vmatpush.bf16.msrb.mxu1 %v677_v16  ;;  %v437_v10 = vperm.slane %v436_v9, 0 }
  0x40   :  { %510 = vmatpush.bf16.msrb.mxu2 %v680_v2 }
  0x41   :  { %401 = vmatpush.bf16.msrb.mxu0 %v678_v15 }
  0x43   :  { %429 = vmatpush.bf16.msrb.mxu1 %v676_v17 }
  0xa6   :  { %v461_v59 = vpop.permute.xlu1 %460 }
  0xa8   :  { %v267_v18 = vpop.permute.xlu0 %266 }
  0xa9   :  { %620 = vmatmul.msk.bf16.vlgmr.msra.gmra.mxu1 %vm248_vm0, %v267_v18  ;;  %647 = vmatmul.msk.bf16.vlgmr.msrb.gmra.mxu0 %vm248_vm0, %v267_v18 }
  0xb9   :  { %656 = vmatmul.msk.bf16.vlgmr.msrb.gmra.mxu1 %vm248_vm0, %v373_v22  ;;  %v261_v23 = vpop.f32.mrf.mxu0 }
  0xbe   :  { %v326_v24 = vpop.f32.mrf.mxu2 }
  0xc0   :  { %v361_v26 = vpop.f32.mrf.mxu3 }
  0xc1   :  { %v263_v25 = vpop.f32.mrf.mxu0 }
  0xc6   :  { %v328_v27 = vpop.f32.mrf.mxu2 }
  0xc8   :  { %v363_v28 = vpop.f32.mrf.mxu3 }
 0x126   :  { %v292_v31 = vpop.f32.mrf.mxu1  ;;  %v403_v32 = vpop.f32.mrf.mxu0 }
 0x127   :  { %v293_v33 = vadd.f32 %v292_v31, %v261_v23 }
 0x129   :  { %v330_v34 = vadd.f32 %v326_v24, %v293_v33 }
 0x12b   :  { %v365_v36 = vadd.f32 %v361_v26, %v330_v34 }
 0x12d   :  { %v369_v37 = vadd.f32 %v368_v35, %v365_v36 }
 0x12e   :  { %v294_v38 = vpop.f32.mrf.mxu1  ;;  %v405_v39 = vpop.f32.mrf.mxu0 }
 0x12f   :  { %699 = vtanh.f32 %v369_v37  ;;  %v657_v44 = vmul.f32 -1.442695, %v369_v37 }
 0x131   :  { %701 = vpow2.f32 %v657_v44 }
 0x135   :  { %v700_v40 = vpop.eup %699 }
 0x136   :  { %v431_v41 = vpop.f32.mrf.mxu1  ;;  %465 = vrot.lane.b32.xlu0 %v700_v40, %s1058_s28 }
 0x137   :  { %v432_v42 = vadd.f32 %v431_v41, %v403_v32  ;;  %v702_v45 = vpop.eup %701 }
 0x138   :  { %v442_v46 = vadd.f32 1.0, %v702_v45 }
 0x139   :  { %v438_v11 = vadd.f32 %v437_v10, %v432_v42 }
 0x13a   :  { %703 = vrcp.f32 %v442_v46  ;;  %v454_v52 = vand.u32 2147483648, %v442_v46  ;;  %vm448_vm2 = vweird.f32 %v442_v46  ;;  %v452_v53 = vand.u32 2147483647, %v442_v46 }
 0x13c   :  { %v455_v55 = vor.u32 1.1754944e-38, %v454_v52  ;;  %vm453_vm4 = vcmp.eq.f32.partialorder %v452_v53, 8.507059e+37 }
 0x13e   :  { %v433_v43 = vpop.f32.mrf.mxu1 }
 0x140   :  { %v704_v47 = vpop.eup %703 }
 0x141   :  { %v444_v48 = vmul.f32 %v704_v47, %v442_v46  ;;  %vm449_vm1 = vweird.f32 %v704_v47 }
 0x142   :  { %vm450_vm3 = vmor %vm448_vm2, %vm449_vm1 }
 0x143   :  { %v445_v49 = vsub.f32 1.0, %v444_v48 }
 0x145   :  { %v446_v50 = vmul.f32 %v704_v47, %v445_v49 }
 0x147   :  { %v447_v51 = vadd.f32 %v704_v47, %v446_v50 }
 0x149   :  { %v451_v54 = vsel %vm450_vm3, %v704_v47, %v447_v51 }
 0x14a   :  { %v456_v56 = vsel %vm453_vm4, %v455_v55, %v451_v54 }
 0x14b   :  { %v463_v60 = vmul.f32 %v461_v59, %v456_v56 }
 0x1a8   :  { %v466_v57 = vpop.permute.xlu0 %465 }
 0x1a9   :  { %v468_v58 = vmul.f32 %v466_v57, %v456_v56 }
 0x1ab   :  { %470 = vrot.lane.b32.xlu1 %v468_v58, %s1058_s28 }
 0x1b3   :  { %537 = vrot.lane.b32.xlu1 %v1192_v0, %s1046_s30 }
 0x21d   :  { %v471_v61 = vpop.permute.xlu1 %470 }
 0x21e   :  { %v473_v62 = vadd.f32 %v471_v61, %v463_v60 }
 0x220   :  { %705 = vtanh.f32 %v473_v62 }
 0x225   :  { %v538_v6 = vpop.permute.xlu1 %537 }
 0x226   :  { %v706_v63 = vpop.eup %705 }
 0x227   :  { %476 = vrot.lane.b32.xlu2 %v706_v63, %s1058_s28 }
 0x281   :  { %v477_v3 = vpop.permute.xlu2 %476 }
 0x282   :  { %v479_v4 = vmul.f32 %v477_v3, %v456_v56 }
 0x284   :  { %558 = vrot.lane.b32.xlu1 %v479_v4, %s1046_s30  ;;  %v480_v5 = vpack.c.bf16 %v479_v4, %v479_v4 }
 0x286   :  { %486 = vrot.lane.b32.xlu2 %v480_v5, %s1046_s30 }
 0x2e0   :  { %v487_v0 = vpop.permute.xlu2 %486 }
 0x2e1   :  { %666 = vmatmul.msk.bf16.vlgmr.msrb.gmra.mxu2 %vm248_vm0, %v487_v0 }
 0x2f6   :  { %v559_v7 = vpop.permute.xlu1 %558 }
 0x2f7   :  { %561 = vst.msk [vmem:[#allocation22] sm:$0xff] %vm248_vm0, %v559_v7 }
 0x364   :  { %v512_v12 = vpop.f32.mrf.mxu2 }
 0x365   :  { %v516_v13 = vadd.f32 %v512_v12, %v438_v11 }
 0x367   :  { %707 = vtanh.f32 %v516_v13  ;;  %v667_v16 = vmul.f32 -1.442695, %v516_v13 }
 0x369   :  { %709 = vpow2.f32 %v667_v16 }
 0x36c   :  { %v514_v14 = vpop.f32.mrf.mxu2 }
 0x36d   :  { %v708_v15 = vpop.eup %707 }
 0x36e   :  { %542 = vrot.lane.b32.xlu0 %v708_v15, %s1058_s28 }
 0x36f   :  { %v710_v17 = vpop.eup %709 }
 0x370   :  { %v520_v18 = vadd.f32 1.0, %v710_v17 }
 0x372   :  { %711 = vrcp.f32 %v520_v18  ;;  %v532_v24 = vand.u32 2147483648, %v520_v18  ;;  %vm526_vm6 = vweird.f32 %v520_v18  ;;  %v530_v25 = vand.u32 2147483647, %v520_v18 }
 0x374   :  { %v533_v27 = vor.u32 1.1754944e-38, %v532_v24  ;;  %vm531_vm8 = vcmp.eq.f32.partialorder %v530_v25, 8.507059e+37 }
 0x378   :  { %v712_v19 = vpop.eup %711 }
 0x379   :  { %v522_v20 = vmul.f32 %v712_v19, %v520_v18  ;;  %vm527_vm5 = vweird.f32 %v712_v19 }
 0x37a   :  { %vm528_vm7 = vmor %vm526_vm6, %vm527_vm5 }
 0x37b   :  { %v523_v21 = vsub.f32 1.0, %v522_v20 }
 0x37d   :  { %v524_v22 = vmul.f32 %v712_v19, %v523_v21 }
 0x37f   :  { %v525_v23 = vadd.f32 %v712_v19, %v524_v22 }
 0x381   :  { %v529_v26 = vsel %vm528_vm7, %v712_v19, %v525_v23 }
 0x382   :  { %v534_v29 = vsel %vm531_vm8, %v533_v27, %v529_v26 }
 0x383   :  { %v540_v31 = vmul.f32 %v538_v6, %v534_v29 }
 0x3e0   :  { %v543_v28 = vpop.permute.xlu0 %542 }
 0x3e1   :  { %v545_v30 = vmul.f32 %v543_v28, %v534_v29 }
 0x3e3   :  { %547 = vrot.lane.b32.xlu2 %v545_v30, %s1058_s28 }
 0x43d   :  { %v548_v32 = vpop.permute.xlu2 %547 }
 0x43e   :  { %v550_v33 = vadd.f32 %v548_v32, %v540_v31 }
 0x440   :  { %713 = vtanh.f32 %v550_v33  ;;  %575 = vrot.lane.b32.xlu1 %v550_v33, %s1046_s30 }
 0x446   :  { %v714_v34 = vpop.eup %713 }
 0x447   :  { %553 = vrot.lane.b32.xlu0 %v714_v34, %s1058_s28 }
 0x44f   :  { %569 = vrot.lane.b32.xlu0 %v473_v62, %s1058_s28 }
 0x4b2   :  { %v576_v39 = vpop.permute.xlu1 %575 }
 0x4b9   :  { %v554_v35 = vpop.permute.xlu0 %553 }
 0x4ba   :  { %v556_v36 = vmul.f32 %v554_v35, %v534_v29 }
 0x4bc   :  { %563 = vrot.lane.b32.xlu2 %v556_v36, %s1057_s12 }
 0x4c1   :  { %v570_v38 = vpop.permute.xlu0 %569 }
 0x516   :  { %v564_v37 = vpop.permute.xlu2 %563 }
 0x517   :  { %567 = vst.msk [vmem:[#allocation22] sm:$0xff] %vm566_vm9, %v564_v37 }
 0x518   :  { %573 = vst.msk [vmem:[#allocation22] sm:$0xff] %vm572_vm10, %v570_v38 }
 0x519   :  { %579 = vst.msk [vmem:[#allocation22] sm:$0xff] %vm578_vm11, %v576_v39 }
 0x51a   :  { %590 = dma.vmem_to_hbm [thread:$0]  %s586_s15, 128, %s588_s17, [#allocation4]  }
 0x51b   :  { %1041 = dma.done.wait [#allocation4], 128  }
 0x51c   :  { %1042 = vsyncadd [#allocation4], 4294967168 }
 0x51d   :  { %595 = vsyncpa [#allocation3], 1 }
 0x51e   :  { %596 = vsyncpa [#allocation6], 1 }
 0x51f   :  { %597 = vsyncpa [#allocation9], 1 }
 0x520   :  { %598 = vsyncpa [#allocation12], 1 }
 0x521   :  { %599 = vsyncpa [#allocation15], 1 }
 0x522   :  { %600 = vsyncpa [#allocation18], 1 }
 0x523   :  { %601 = vsyncpa [#allocation21], 1 }
 0x524   :  { %602 = vsyncpa [#allocation4], 1 }

</bundles_post_ra>
